<compile_context>
chip_gen: v7x
topology: tpu7x:2x2x1
jax: 0.10.0
libtpu: 0.0.40
codegen_flags: <defaults>
</compile_context>

<pallas_src>
import jax
import jax.numpy as jnp
from jax import lax
from jax.experimental import pallas as pl
from jax.experimental.pallas import tpu as pltpu


# ----------------------------- Pallas kernels --------------------------------

def _conv_relu_heads(x, w3_ref, b3_ref, wh_ref, bh_ref):
    """Fused 3x3-conv + bias + ReLU + folded 1x1 heads for one halo'd row tile.

    x      : (TH+2, W+2, Cin) bf16 value (1-px zero halo included)
    w3_ref : (9*Cin, Cin)     bf16 im2col conv weight, (ky, kx, cin) flattening
    b3_ref : (1, Cin)         f32  conv bias
    wh_ref : (Cpad, Cin)      bf16 folded head weight  [W_cls_eff ; W_bbox ; 0]
    bh_ref : (Cpad, 1)        f32  folded head bias
    returns: (Cpad, TH*W)     f32  channel-major head outputs
    """
    thp2, wp2, cin = x.shape
    th, w = thp2 - 2, wp2 - 2

    # im2col: one (TH*W, 9*Cin) tap matrix -> a single wide-K MXU matmul.
    taps = jnp.concatenate(
        [x[dy:dy + th, dx:dx + w, :] for dy in range(3) for dx in range(3)],
        axis=-1).reshape(th * w, 9 * cin)
    conv = jnp.dot(taps, w3_ref[...], preferred_element_type=jnp.float32)
    feat = jnp.maximum(conv + b3_ref[...], 0.0).astype(jnp.bfloat16)   # (M, Cin)

    # Folded heads as one NT matmul (contract both operands on their last axis,
    # same structure as q @ k^T in flash attention) -> channel-major (Cpad, M)
    # with the spatial axis on lanes, so the store is lane-dense and unmasked.
    head = lax.dot_general(wh_ref[...], feat, (((1,), (1,)), ((), ())),
                           preferred_element_type=jnp.float32)
    return head + bh_ref[...]


def _whole_image_kernel(x_ref, w3_ref, b3_ref, wh_ref, bh_ref, o_ref):
    # x_ref: (1, H+2, W+2, Cin) bf16 ; o_ref: (1, Cpad, H*W) f32
    o_ref[0] = _conv_relu_heads(x_ref[0], w3_ref, b3_ref, wh_ref, bh_ref)


def _row_tiled_kernel(x_hbm, w3_ref, b3_ref, wh_ref, bh_ref, o_ref, xbuf):
    # x_hbm: full (N, H+2, W+2, Cin) bf16 left in HBM (memory_space=pl.ANY).
    # The overlapping (TH+2)-row halo window is DMA'd here, so no wrapper-side
    # duplicated-halo copy of the activation ever exists in HBM.
    n, h = pl.program_id(0), pl.program_id(1)
    th = xbuf.shape[0] - 2
    pltpu.sync_copy(x_hbm.at[n, pl.ds(h * th, th + 2)], xbuf)
    o_ref[0, 0] = _conv_relu_heads(xbuf[...], w3_ref, b3_ref, wh_ref, bh_ref)


# ------------------------- Generation-aware tiling ----------------------------

def _vmem_plan():
    """Returns (tile_budget_bytes, vmem_limit_bytes) derived from the actual chip."""
    try:
        cap = int(pltpu.get_tpu_info().vmem_capacity_bytes)  # 64 MiB v7x, 128 MiB v5e/v6e
    except Exception:                                        # no hw info -> conservative (v7x)
        cap = 64 * 1024 * 1024
    return (cap * 5) // 8, (cap * 3) // 4


def _tile_footprint_bytes(th, W, Cin, Cpad, *, whole_image):
    """VMEM needed for one grid step: pipeline buffers + resident weights + temps."""
    m, wp = th * W, W + 2
    inp = (th + 2) * wp * Cin * 2                    # bf16 halo'd input tile
    outp = Cpad * m * 4                              # f32 channel-major output tile
    weights = (9 * Cin * Cin + Cpad * Cin) * 2 + (Cin + Cpad) * 4
    temps = m * (9 * Cin * 2            # im2col tap matrix (bf16)
                 + Cin * (4 + 2)        # f32 conv accumulator + bf16 feat
                 + Cpad * 4)            # f32 head result
    n_in = 2 if whole_image else 1      # auto-pipelined (double-buffered) vs manual scratch
    return n_in * inp + 2 * outp + 2 * weights + temps


def _plan_tiles(N, H, W, Cin, Cpad, budget):
    """Pick (tile_h, whole_image): whole images (zero halo) whenever they fit the
    generation-aware budget; otherwise the largest row tile that fits while keeping
    the grid >= 2 steps (so both v7x TensorCores get work)."""
    if N >= 2 and _tile_footprint_bytes(H, W, Cin, Cpad, whole_image=True) <= budget:
        return H, True
    best = 1
    for th in range(1, H + 1):
        if H % th:
            continue
        if N * (H // th) < 2 <= N * H:               # keep >= 2 grid steps when possible
            continue
        if _tile_footprint_bytes(th, W, Cin, Cpad, whole_image=False) <= budget:
            best = th
    return best, False


# ---------------------------------- Wrapper -----------------------------------

def ba_rpn_head_forward(x_nchw, params, *, tile_h=None):
    """Forward pass of BackgroundAwareRPNHead. NCHW f32 in, f32 outs."""
    N, Cin, H, W = x_nchw.shape
    A2, S = params["cls_w"].shape             # (2A, S)
    A4 = params["bbox_w"].shape[0]            # 4A
    Cout = A2 + A4
    Cpad = max(8, -(-Cout // 8) * 8)          # f32 sublane pad only (24 for Cout=18)

    # ---- fold the purely-linear 1x1 chain (exact: no activation/norm between
    #      semantic_encoder, voc_convs and cls_logits in the reference module) ----
    w_cls = (params["cls_w"] @ params["voc1_w"] @ params["voc0_w"]
             @ params["se_w"])                                               # (2A, Cin)
    b_cls = (params["cls_w"] @ (params["voc1_w"] @ (params["voc0_w"] @ params["se_b"])
                                + params["voc1_b"]) + params["cls_b"])       # (2A,)
    w_head = (jnp.zeros((Cpad, Cin), jnp.float32)
              .at[:A2].set(w_cls)
              .at[A2:Cout].set(params["bbox_w"])).astype(jnp.bfloat16)
    b_head = (jnp.zeros((Cpad, 1), jnp.float32)
              .at[:A2, 0].set(b_cls)
              .at[A2:Cout, 0].set(params["bbox_b"]))

    # 3x3 conv weight as a single (9*Cin, Cin) im2col matrix ((ky,kx,cin) flattening).
    w3 = (jnp.transpose(params["conv_w"], (2, 3, 1, 0))
          .reshape(9 * Cin, Cin).astype(jnp.bfloat16))
    b3 = params["conv_b"].reshape(1, Cin)

    # ---- input prep: ONE fused XLA pass (NCHW->NHWC, bf16 cast, 1-px zero pad).
    #      No duplicated halo copies are ever materialized in HBM. ----
    xp = jnp.pad(jnp.transpose(x_nchw, (0, 2, 3, 1)).astype(jnp.bfloat16),
                 ((0, 0), (1, 1), (1, 1), (0, 0)))            # (N, H+2, W+2, Cin)
    Wp = W + 2

    budget, vmem_limit = _vmem_plan()
    if tile_h is None:
        TH, whole = _plan_tiles(N, H, W, Cin, Cpad, budget)
    else:
        TH, whole = int(tile_h), False                        # explicit override -> tiled path
    assert H % TH == 0, "tile_h must divide H"
    nH, M = H // TH, TH * W

    cost = pl.CostEstimate(
        flops=2 * N * H * W * Cin * (9 * Cin + Cpad),
        transcendentals=0,
        bytes_accessed=(xp.size * 2 + (w3.size + w_head.size) * 2
                        + (b3.size + b_head.size) * 4 + N * Cpad * H * W * 4))

    # Resident operands (constant index_map) are still double-buffered by the
    # auto-pipeliner; that cost is included in _tile_footprint_bytes above, so the
    # planner already trades it against the row-tile size.
    if whole:
        # Whole-image blocks: zero halo, pure BlockSpec pipelining, grid over images.
        out = pl.pallas_call(
            _whole_image_kernel,
            out_shape=jax.ShapeDtypeStruct((N, Cpad, H * W), jnp.float32),
            grid_spec=pltpu.PrefetchScalarGridSpec(
                num_scalar_prefetch=0,
                grid=(N,),
                in_specs=[
                    pl.BlockSpec((1, H + 2, Wp, Cin), lambda n: (n, 0, 0, 0)),
                    pl.BlockSpec((9 * Cin, Cin), lambda n: (0, 0)),
                    pl.BlockSpec((1, Cin), lambda n: (0, 0)),
                    pl.BlockSpec((Cpad, Cin), lambda n: (0, 0)),
                    pl.BlockSpec((Cpad, 1), lambda n: (0, 0)),
                ],
                out_specs=pl.BlockSpec((1, Cpad, H * W), lambda n: (n, 0, 0)),
            ),
            compiler_params=pltpu.CompilerParams(
                dimension_semantics=("parallel",),
                vmem_limit_bytes=vmem_limit),
            cost_estimate=cost,
        )(xp, w3, b3, w_head, b_head)
        out_nchw = out.reshape(N, Cpad, H, W)                 # already channel-major
    else:
        # Row-tiled fallback: padded image stays in HBM; the kernel DMAs its own
        # (TH+2)-row halo window (overlap rows are re-read, never duplicated in HBM).
        out = pl.pallas_call(
            _row_tiled_kernel,
            out_shape=jax.ShapeDtypeStruct((N, nH, Cpad, M), jnp.float32),
            grid_spec=pltpu.PrefetchScalarGridSpec(
                num_scalar_prefetch=0,
                grid=(N, nH),
                in_specs=[
                    pl.BlockSpec(memory_space=pl.ANY),         # raw HBM ref, manual DMA
                    pl.BlockSpec((9 * Cin, Cin), lambda n, h: (0, 0)),
                    pl.BlockSpec((1, Cin), lambda n, h: (0, 0)),
                    pl.BlockSpec((Cpad, Cin), lambda n, h: (0, 0)),
                    pl.BlockSpec((Cpad, 1), lambda n, h: (0, 0)),
                ],
                out_specs=pl.BlockSpec((1, 1, Cpad, M), lambda n, h: (n, h, 0, 0)),
                scratch_shapes=[pltpu.VMEM((TH + 2, Wp, Cin), jnp.bfloat16)],
            ),
            compiler_params=pltpu.CompilerParams(
                dimension_semantics=("parallel", "parallel"),  # sync per-step DMA -> safe
                vmem_limit_bytes=vmem_limit),
            cost_estimate=cost,
        )(xp, w3, b3, w_head, b_head)
        out_nchw = (out.reshape(N, nH, Cpad, TH, W)
                    .transpose(0, 2, 1, 3, 4).reshape(N, Cpad, H, W))

    cls_score = out_nchw[:, :A2]                  # (N, 2A, H, W) f32
    bbox_pred = out_nchw[:, A2:Cout]              # (N, 4A, H, W) f32
    # Module forward semantics: mean over the *current* even cls weight rows.
    bg_vec = jnp.mean(params["cls_w"][::2], axis=0).reshape(S, 1, 1)
    return cls_score, bbox_pred, bg_vec


# ----------------------- Pure-JAX reference (unfused) -------------------------

def _reference_forward(x, params):
    """f32 reference of the UNFUSED / UNFOLDED module forward (validates the fold)."""
    y = lax.conv_general_dilated(x, params["conv_w"], (1, 1), "SAME",
                                 dimension_numbers=("NCHW", "OIHW", "NCHW"))
    y = jax.nn.relu(y + params["conv_b"][None, :, None, None])

    def conv1x1(t, w, b=None):
        o = jnp.einsum("nchw,oc->nohw", t, w)
        return o if b is None else o + b[None, :, None, None]

    sem = conv1x1(y, params["se_w"], params["se_b"])
    sem = conv1x1(sem, params["voc0_w"])                   # frozen voc conv, bias=False
    sem = conv1x1(sem, params["voc1_w"], params["voc1_b"])
    cls = conv1x1(sem, params["cls_w"], params["cls_b"])
    bbox = conv1x1(y, params["bbox_w"], params["bbox_b"])
    bg = jnp.mean(params["cls_w"][::2], axis=0).reshape(-1, 1, 1)
    return cls, bbox, bg


# ------------------------ Deterministic parameter init ------------------------

def init_params(key, in_channels, num_anchors, semantic_channels,
                hidden_channels, num_words=5):
    """Mirrors BackgroundAwareRPNHead.__init__ with synthetic word vectors.
    Weights are stored in PyTorch layouts; the wrapper does the transposes/folds."""
    ks = jax.random.split(key, 8)
    std = 0.01

    # synthetic "load_word_vectors" outputs (vec_path / voc_path contents)
    vec = jax.random.normal(ks[0], (num_words, semantic_channels), jnp.float32)
    voc = jax.random.normal(ks[1], (hidden_channels, semantic_channels), jnp.float32)
    bg_vec = vec[0]

    # _init_weights: Conv2d weights ~ N(0, 0.01), biases zero
    conv_w = std * jax.random.normal(ks[2], (in_channels, in_channels, 3, 3), jnp.float32)
    se_w   = std * jax.random.normal(ks[3], (semantic_channels, in_channels), jnp.float32)
    cls_w  = std * jax.random.normal(ks[4], (num_anchors * 2, semantic_channels), jnp.float32)
    bbox_w = std * jax.random.normal(ks[5], (num_anchors * 4, in_channels), jnp.float32)
    voc1_w = std * jax.random.normal(ks[6], (semantic_channels, hidden_channels), jnp.float32)

    # _init_cls_logits: every even output-channel weight row := bg_vec
    cls_w = cls_w.at[::2].set(jnp.broadcast_to(bg_vec, (num_anchors, semantic_channels)))

    return dict(
        conv_w=conv_w,                                  # (Cout, Cin, 3, 3)
        conv_b=jnp.zeros((in_channels,), jnp.float32),
        se_w=se_w,                                      # (S, Cin)
        se_b=jnp.zeros((semantic_channels,), jnp.float32),
        voc0_w=voc,                                     # (Hd, S), bias=False (frozen)
        voc1_w=voc1_w,                                  # (S, Hd)
        voc1_b=jnp.zeros((semantic_channels,), jnp.float32),
        cls_w=cls_w,                                    # (2A, S)
        cls_b=jnp.zeros((num_anchors * 2,), jnp.float32),
        bbox_w=bbox_w,                                  # (4A, Cin)
        bbox_b=jnp.zeros((num_anchors * 4,), jnp.float32),
    )


# ----------------------------------- Main --------------------------------------

if __name__ == "__main__":
    N, Cin, H, W = 2, 16, 16, 16
    num_anchors, semantic_channels, hidden_channels = 3, 32, 8

    key = jax.random.PRNGKey(0)
    k_x, k_p = jax.random.split(key)
    x = jax.random.normal(k_x, (N, Cin, H, W), jnp.float32)        # NCHW, like PyTorch
    params = init_params(k_p, Cin, num_anchors, semantic_channels, hidden_channels)

    fwd = jax.jit(ba_rpn_head_forward, static_argnames=("tile_h",))

    # Default plan: whole-image blocks (grid=(N,), no halo, channel-major store).
    cls_a, box_a, bg_a = fwd(x, params)
    jax.block_until_ready((cls_a, box_a, bg_a))

    # Forced row-tiled fallback (manual halo DMA path) -- must agree with the default.
    cls_b, box_b, _ = fwd(x, params, tile_h=8)
    jax.block_until_ready((cls_b, box_b))

    # Unfused / unfolded pure-JAX f32 reference (validates the head-chain fold).
    cls_r, box_r, bg_r = _reference_forward(x, params)

    assert cls_a.shape == (N, num_anchors * 2, H, W)
    assert box_a.shape == (N, num_anchors * 4, H, W)
    assert bg_a.shape == (semantic_channels, 1, 1)
    assert bool(jnp.all(jnp.isfinite(cls_a))) and bool(jnp.all(jnp.isfinite(box_a)))
    assert float(jnp.max(jnp.abs(cls_a - cls_b))) < 1e-5           # both kernel paths agree
    assert float(jnp.max(jnp.abs(box_a - box_b))) < 1e-5
    assert float(jnp.max(jnp.abs(cls_a - cls_r))) < 2e-3           # bf16 MXU vs f32 reference
    assert float(jnp.max(jnp.abs(box_a - box_r))) < 2e-3
    assert float(jnp.max(jnp.abs(bg_a - bg_r))) < 1e-6
    print("KERNEL_OK")
</pallas_src>

<mosaic_0001>
module attributes {stable_mosaic.version = 11 : i64} {
  func.func @_whole_image_kernel(%arg0: i32, %arg1: memref<1x18x18x16xbf16, #tpu.memory_space<vmem>>, %arg2: memref<144x16xbf16, #tpu.memory_space<vmem>>, %arg3: memref<1x16xf32, #tpu.memory_space<vmem>>, %arg4: memref<24x16xbf16, #tpu.memory_space<vmem>>, %arg5: memref<24x1xf32, #tpu.memory_space<vmem>>, %arg6: memref<1x24x256xf32, #tpu.memory_space<vmem>>) attributes {dimension_semantics = [#tpu.dimension_semantics<parallel>], iteration_bounds = array<i64: 2>, scalar_prefetch = 0 : i64, scratch_operands = 0 : i64, tpu.core_type = #tpu.core_type<tc>, window_params = [{transform_indices = @transform_0, window_bounds = array<i64: 1, 18, 18, 16>}, {pipeline_mode = #tpu.pipeline_mode<synchronous>, transform_indices = @transform_1, window_bounds = array<i64: 144, 16>}, {pipeline_mode = #tpu.pipeline_mode<synchronous>, transform_indices = @transform_2, window_bounds = array<i64: 1, 16>}, {pipeline_mode = #tpu.pipeline_mode<synchronous>, transform_indices = @transform_3, window_bounds = array<i64: 24, 16>}, {pipeline_mode = #tpu.pipeline_mode<synchronous>, transform_indices = @transform_4, window_bounds = array<i64: 24, 1>}, {transform_indices = @transform_5, window_bounds = array<i64: 1, 24, 256>}]} {
    %c0 = arith.constant 0 : index
    %c0_0 = arith.constant 0 : index
    %c0_1 = arith.constant 0 : index
    %c0_2 = arith.constant 0 : index
    %0 = vector.load %arg1[%c0, %c0_0, %c0_1, %c0_2] : memref<1x18x18x16xbf16, #tpu.memory_space<vmem>>, vector<1x18x18x16xbf16>
    %1 = vector.shape_cast %0 : vector<1x18x18x16xbf16> to vector<18x18x16xbf16>
    %2 = vector.extract_strided_slice %1 {offsets = [0, 0, 0], sizes = [16, 16, 16], strides = [1, 1, 1]} : vector<18x18x16xbf16> to vector<16x16x16xbf16>
    %3 = vector.extract_strided_slice %1 {offsets = [0, 1, 0], sizes = [16, 16, 16], strides = [1, 1, 1]} : vector<18x18x16xbf16> to vector<16x16x16xbf16>
    %4 = vector.extract_strided_slice %1 {offsets = [0, 2, 0], sizes = [16, 16, 16], strides = [1, 1, 1]} : vector<18x18x16xbf16> to vector<16x16x16xbf16>
    %5 = vector.extract_strided_slice %1 {offsets = [1, 0, 0], sizes = [16, 16, 16], strides = [1, 1, 1]} : vector<18x18x16xbf16> to vector<16x16x16xbf16>
    %6 = vector.extract_strided_slice %1 {offsets = [1, 1, 0], sizes = [16, 16, 16], strides = [1, 1, 1]} : vector<18x18x16xbf16> to vector<16x16x16xbf16>
    %7 = vector.extract_strided_slice %1 {offsets = [1, 2, 0], sizes = [16, 16, 16], strides = [1, 1, 1]} : vector<18x18x16xbf16> to vector<16x16x16xbf16>
    %8 = vector.extract_strided_slice %1 {offsets = [2, 0, 0], sizes = [16, 16, 16], strides = [1, 1, 1]} : vector<18x18x16xbf16> to vector<16x16x16xbf16>
    %9 = vector.extract_strided_slice %1 {offsets = [2, 1, 0], sizes = [16, 16, 16], strides = [1, 1, 1]} : vector<18x18x16xbf16> to vector<16x16x16xbf16>
    %10 = vector.extract_strided_slice %1 {offsets = [2, 2, 0], sizes = [16, 16, 16], strides = [1, 1, 1]} : vector<18x18x16xbf16> to vector<16x16x16xbf16>
    %11 = tpu.concatenate %2, %3, %4, %5, %6, %7, %8, %9, %10 in 2 : vector<16x16x16xbf16>, vector<16x16x16xbf16>, vector<16x16x16xbf16>, vector<16x16x16xbf16>, vector<16x16x16xbf16>, vector<16x16x16xbf16>, vector<16x16x16xbf16>, vector<16x16x16xbf16>, vector<16x16x16xbf16> -> vector<16x16x144xbf16>
    %12 = vector.shape_cast %11 : vector<16x16x144xbf16> to vector<256x144xbf16>
    %c0_3 = arith.constant 0 : index
    %c0_4 = arith.constant 0 : index
    %13 = vector.load %arg2[%c0_3, %c0_4] : memref<144x16xbf16, #tpu.memory_space<vmem>>, vector<144x16xbf16>
    %cst = arith.constant dense<0.000000e+00> : vector<256x16xf32>
    %14 = tpu.matmul %12, %13, %cst {dimension_numbers = #tpu.dot_dimension_numbers<[1], [0], [0], [1], [0, 0, 1, 1], [], []>} : vector<256x144xbf16>, vector<144x16xbf16>, vector<256x16xf32> -> vector<256x16xf32>
    %c0_5 = arith.constant 0 : index
    %c0_6 = arith.constant 0 : index
    %15 = vector.load %arg3[%c0_5, %c0_6] : memref<1x16xf32, #tpu.memory_space<vmem>>, vector<1x16xf32>
    %16 = vector.broadcast %15 : vector<1x16xf32> to vector<256x16xf32>
    %17 = arith.addf %14, %16 : vector<256x16xf32>
    %cst_7 = arith.constant 0.000000e+00 : f32
    %18 = vector.broadcast %cst_7 : f32 to vector<256x16xf32>
    %19 = arith.maximumf %17, %18 : vector<256x16xf32>
    %20 = arith.truncf %19 : vector<256x16xf32> to vector<256x16xbf16>
    %c0_8 = arith.constant 0 : index
    %c0_9 = arith.constant 0 : index
    %21 = vector.load %arg4[%c0_8, %c0_9] : memref<24x16xbf16, #tpu.memory_space<vmem>>, vector<24x16xbf16>
    %cst_10 = arith.constant dense<0.000000e+00> : vector<24x256xf32>
    %22 = tpu.matmul %21, %20, %cst_10 {dimension_numbers = #tpu.dot_dimension_numbers<[1], [1], [0], [0], [0, 0, 1, 0], [], []>} : vector<24x16xbf16>, vector<256x16xbf16>, vector<24x256xf32> -> vector<24x256xf32>
    %c0_11 = arith.constant 0 : index
    %c0_12 = arith.constant 0 : index
    %23 = vector.load %arg5[%c0_11, %c0_12] : memref<24x1xf32, #tpu.memory_space<vmem>>, vector<24x1xf32>
    %24 = vector.broadcast %23 : vector<24x1xf32> to vector<24x256xf32>
    %25 = arith.addf %22, %24 : vector<24x256xf32>
    %c0_13 = arith.constant 0 : index
    %c0_14 = arith.constant 0 : index
    %c0_15 = arith.constant 0 : index
    %26 = vector.load %arg6[%c0_13, %c0_14, %c0_15] : memref<1x24x256xf32, #tpu.memory_space<vmem>>, vector<1x24x256xf32>
    %27 = vector.shape_cast %26 : vector<1x24x256xf32> to vector<24x256xf32>
    %28 = vector.shape_cast %25 : vector<24x256xf32> to vector<1x24x256xf32>
    tpu.vector_store %arg6[%c0_13, %c0_14, %c0_15], %28 {strides = array<i32>} : memref<1x24x256xf32, #tpu.memory_space<vmem>>, vector<1x24x256xf32>,
    return
  }
  func.func @transform_0(%arg0: i32) -> (i32, i32, i32, i32) {
    %c0_i32 = arith.constant 0 : i32
    %c0_i32_0 = arith.constant 0 : i32
    %c0_i32_1 = arith.constant 0 : i32
    %c0_i32_2 = arith.constant 0 : i32
    return %arg0, %c0_i32, %c0_i32_0, %c0_i32_1 : i32, i32, i32, i32
  }
  func.func @transform_1(%arg0: i32) -> (i32, i32) {
    %c0_i32 = arith.constant 0 : i32
    %c0_i32_0 = arith.constant 0 : i32
    %c0_i32_1 = arith.constant 0 : i32
    return %c0_i32, %c0_i32_0 : i32, i32
  }
  func.func @transform_2(%arg0: i32) -> (i32, i32) {
    %c0_i32 = arith.constant 0 : i32
    %c0_i32_0 = arith.constant 0 : i32
    %c0_i32_1 = arith.constant 0 : i32
    return %c0_i32, %c0_i32_0 : i32, i32
  }
  func.func @transform_3(%arg0: i32) -> (i32, i32) {
    %c0_i32 = arith.constant 0 : i32
    %c0_i32_0 = arith.constant 0 : i32
    %c0_i32_1 = arith.constant 0 : i32
    return %c0_i32, %c0_i32_0 : i32, i32
  }
  func.func @transform_4(%arg0: i32) -> (i32, i32) {
    %c0_i32 = arith.constant 0 : i32
    %c0_i32_0 = arith.constant 0 : i32
    %c0_i32_1 = arith.constant 0 : i32
    return %c0_i32, %c0_i32_0 : i32, i32
  }
  func.func @transform_5(%arg0: i32) -> (i32, i32, i32) {
    %c0_i32 = arith.constant 0 : i32
    %c0_i32_0 = arith.constant 0 : i32
    %c0_i32_1 = arith.constant 0 : i32
    return %arg0, %c0_i32, %c0_i32_0 : i32, i32, i32
  }
}

</mosaic_0001>

<bundles_post_ra>
// kernel: ba_rpn_head_forward.1
= control target key start
LH: loop header
LB: loop body
LE: loop exit
PB: predicated region body
PF: predicated region fallthrough
CT: control target
= control target key end

     0   :  { %s1914_s18 = smov 0   ;;  %s2607_s0 = inlined_call_operand.vmem [shape: bf16[2,18,18,16], index: 0, kind: input, shape index: {}]   ;;  %s2608_s1 = inlined_call_operand.vmem [shape: bf16[144,16], index: 1, kind: input, shape index: {}]   ;;  %s2609_s2 = inlined_call_operand.vmem [shape: f32[1,16], index: 2, kind: input, shape index: {}]   ;;  %s2610_s3 = inlined_call_operand.vmem [shape: bf16[24,16], index: 3, kind: input, shape index: {}]   ;;  %s2611_s4 = inlined_call_operand.vmem [shape: f32[24,1], index: 4, kind: input, shape index: {}]   ;;  %s2612_s5 = inlined_call_operand.vmem [shape: f32[2,24,256], index: 5, kind: output, shape index: {}]  }
   0x1 LB: > { %s1698_s19 = sadd.s32 4294967295, %s1874_s18   ;;  %p1702_p0 = scmp.ge.s32.totalorder %s1874_s18, 1  ;;  %s1874_s18 = sphi %s1914_s18, %s15_s18  }
   0x2   : > { %p187_p1 = scmp.lt.s32.totalorder %s1874_s18, 3 }
   0x4   : > { %p188_p2 = pnand %p1702_p0, %p187_p1 }
   0x5   : > { %p215_p3 = scmp.lt.s32.totalorder (!%p188_p2), %s1698_s19, 1  ;;  %v1876_v0 = vmov (!%p188_p2), 0   ;;  %v1839_v1 = vld [vmem:[%s2608_s1] sm:$0xff] (!%p188_p2)   ;;  %v1840_v2 = vld [vmem:[%s2608_s1 + $0x8] sm:$0xff] (!%p188_p2)   ;;  %vm633_vm0 = vcmask (!%p188_p2), 1046528   ;;  %v1841_v3 = vld [vmem:[%s2608_s1 + $0x10] sm:$0xff] (!%p188_p2)  }
   0x6   : > { %191 = sbr.rel (%p188_p2) target bundleno = 810 (0x32a), region = 40  ;;  %1294 = vmatprep.subr.bf16.mxu0 (!%p188_p2), %v1876_v0  ;;  %1819 = vset.pattern.permute.xlu0 (!%p188_p2), %v1876_v0  ;;  %vm408_vm1 = vsmask.f32 (!%p188_p2), 7424  ;;  %s1877_s30 = smov (!%p188_p2), 48   ;;  %v1844_v8 = vld [vmem:[%s2608_s1 + $0x18] sm:$0xff] (!%p188_p2)   ;;  %v1845_v29 = vld [vmem:[%s2608_s1 + $0x20] sm:$0xff] (!%p188_p2)  }
   0x7   : > { %1820 = vset.pattern.permute.xlu1 (!%p188_p2), %v1876_v0  ;;  %1295 = vmatpush1.bf16.msra.mxu0 (!%p188_p2), %v1839_v1  ;;  %s1878_s8 = smov (!%p188_p2), 96   ;;  %s1879_s9 = smov (!%p188_p2), 32   ;;  %v1846_v51 = vld [vmem:[%s2608_s1 + $0x28] sm:$0xff] (!%p188_p2)   ;;  %v1848_v53 = vld [vmem:[%s2608_s1 + $0x30] sm:$0xff] (!%p188_p2)   ;;  %v1850_v55 = vld [vmem:[%s2608_s1 + $0x38] sm:$0xff] (!%p188_p2)   ;;  %vm920_vm2 = vcmask (!%p188_p2), 130048  }
   0x8   : > { %1296 = vmatprep.subr.bf16.mxu0 (!%p188_p2), %v1876_v0  ;;  %s1880_s12 = smov (!%p188_p2), 80   ;;  %s1881_s13 = smov (!%p188_p2), 64   ;;  %v1851_v61 = vld [vmem:[%s2608_s1 + $0x40] sm:$0xff] (!%p188_p2)   ;;  %vm953_vm3 = vcmask (!%p188_p2), 261120   ;;  %vm986_vm4 = vcmask (!%p188_p2), 392192   ;;  %vm1019_vm5 = vcmask (!%p188_p2), 523264  }
   0x9   : > { %s1882_s14 = smov (!%p188_p2), 16   ;;  %s1883_s15 = smov (!%p188_p2), 112   ;;  %vm1052_vm6 = vcmask (!%p188_p2), 654336   ;;  %vm1085_vm7 = vcmask (!%p188_p2), 785408   ;;  %vm1118_vm8 = vcmask (!%p188_p2), 916480  }
   0xb   : > { %1297 = vmatpush1.bf16.msra.mxu0 (!%p188_p2), %v1840_v2 }
   0xc   : > { %1298 = vmatprep.subr.bf16.mxu0 (!%p188_p2), %v1876_v0 }
   0xd   : > { %s2614_s19 = smov (!%p215_p3, %s1698_s19), 1 }
   0xe   : > { %s1801_s22 = smul.u32 216, %s2614_s19 }
   0xf   : > { %1299 = vmatpush1.bf16.msra.mxu0 %v1841_v3 }
  0x10   : > { %s1938_s27 = scalar_lea.vmem %s2607_s0, %s1801_s22  ;;  %1300 = vmatprep.subr.bf16.mxu0 %v1876_v0 }
  0x11   : > { %v1944_v4 = vld [vmem:[%s1938_s27 + $0xc] sm:$0xff]   ;;  %v1949_v5 = vld [vmem:[%s1938_s27] sm:$0xff]   ;;  %v1823_v6 = vld [vmem:[%s1938_s27 + $0x8] ss:$0 sps:$4 sm:$0x11]  }
  0x12   : > { %719 = vrot.lane.b32.xlu1 %v1944_v4, %s1877_s30  ;;  %v1954_v7 = vld [vmem:[%s1938_s27 + $0x18] sm:$0xff]   ;;  %v634_v9 = vrot.slane %v1949_v5, 1  ;;  %v635_v10 = vrot.slane %v1823_v6, 1  ;;  %v1825_v11 = vld [vmem:[%s1938_s27 + $0x14] ss:$0 sps:$4 sm:$0x11]  }
  0x13   : > { %v637_v12 = vrot.slane %v1944_v4, 1  ;;  %v422_v13 = vshrl.u32 %v1944_v4, 16  ;;  %v424_v14 = vshll.u32 %v1944_v4, 16  ;;  %v410_v15 = vshrl.u32 %v1949_v5, 16  ;;  %v1975_v27 = vld [vmem:[%s1938_s27 + $0x24] sm:$0xff]   ;;  %1301 = vmatpush1.bf16.msra.mxu0 %v1844_v8  ;;  %v2010_v52 = vld [vmem:[%s1938_s27 + $0x30] sm:$0xff]  }
  0x14   : > { %v412_v16 = vshll.u32 %v1949_v5, 16  ;;  %v636_v17 = vsel %vm633_vm0, %v634_v9, %v635_v10  ;;  %v638_v18 = vrot.slane %v1825_v11, 1  ;;  %v429_v19 = vshll.u32 %v1825_v11, 16  ;;  %v1826_v22 = vld [vmem:[%s1938_s27 + $0x20] ss:$0 sps:$4 sm:$0x11]   ;;  %1302 = vmatprep.subr.bf16.mxu0 %v1876_v0 }
  0x15   : > { %v417_v20 = vshll.u32 %v1823_v6, 16  ;;  %682 = vrot.lane.b32.xlu0 %v636_v17, %s1879_s9  ;;  %v426_v21 = vrot.slane %v424_v14, 1  ;;  %v436_v26 = vshll.u32 %v1954_v7, 16  ;;  %v1983_v30 = vld [vmem:[%s1938_s27 + $0x2c] ss:$0 sps:$4 sm:$0x11]  }
  0x16   : > { %838 = vrot.lane.b32.xlu1 %v1954_v7, %s1878_s8  ;;  %v639_v23 = vsel %vm633_vm0, %v637_v12, %v638_v18  ;;  %v431_v24 = vrot.slane %v429_v19, 1  ;;  %v414_v25 = vrot.slane %v412_v16, 1  ;;  %v434_v32 = vshrl.u32 %v1954_v7, 16  ;;  %v1830_v54 = vld [vmem:[%s1938_s27 + $0x38] ss:$0 sps:$4 sm:$0x11]  }
  0x17   : > { %v427_v28 = vor.u32 %v426_v21, %v422_v13  ;;  %v448_v33 = vshll.u32 %v1975_v27, 16  ;;  %v419_v35 = vrot.slane %v417_v20, 1  ;;  %v438_v36 = vrot.slane %v436_v26, 1  ;;  %1303 = vmatpush1.bf16.msra.mxu0 %v1845_v29  ;;  %v2032_v60 = vld [vmem:[%s1938_s27 + $0x3c] sm:$0xff]   ;;  %v2067_v18 = vld [vmem:[%s1938_s27 + $0x48] sm:$0xff]  }
  0x18   : > { %v415_v34 = vor.u32 %v414_v25, %v410_v15  ;;  %v441_v37 = vshll.u32 %v1826_v22, 16  ;;  %v640_v38 = vrot.slane %v1954_v7, 1  ;;  %1304 = vmatprep.subr.bf16.mxu0 %v1876_v0  ;;  %v641_v39 = vrot.slane %v1826_v22, 1  ;;  %v1832_v1 = vld [vmem:[%s1938_s27 + $0x44] ss:$0 sps:$4 sm:$0x11]  }
  0x19   : > { %801 = vrot.lane.b32.xlu0 %v639_v23, %s1880_s12  ;;  %v432_v31 = vsel %vm408_vm1, %v427_v28, %v431_v24  ;;  %v446_v40 = vshrl.u32 %v1975_v27, 16  ;;  %v450_v41 = vrot.slane %v448_v33, 1  ;;  %v453_v42 = vshll.u32 %v1983_v30, 16  ;;  %v1834_v19 = vld [vmem:[%s1938_s27 + $0x50] ss:$0 sps:$4 sm:$0x11]  }
  0x1a   : > { %721 = vrot.lane.b32.xlu1 %v1954_v7, %s1877_s30  ;;  %v420_v43 = vsel %vm408_vm1, %v415_v34, %v419_v35  ;;  %v439_v44 = vor.u32 %v438_v36, %v434_v32  ;;  %v443_v45 = vrot.slane %v441_v37, 1  ;;  %v642_v46 = vsel %vm633_vm0, %v640_v38, %v641_v39  ;;  %v2079_v22 = vld [vmem:[%s1938_s27 + $0x54] sm:$0xff]   ;;  %v1836_v28 = vld [vmem:[%s1938_s27 + $0x5c] ss:$0 sps:$4 sm:$0x11]  }
  0x1b   : > { %v451_v47 = vor.u32 %v450_v41, %v446_v40  ;;  %v455_v48 = vrot.slane %v453_v42, 1  ;;  %1305 = vmatpush1.bf16.msra.mxu0 %v1846_v51  ;;  %v460_v56 = vshll.u32 %v2010_v52, 16  ;;  %1751 = vmatprep.mubr.msk.bf16.mxu0 %vm920_vm2, %v642_v46  ;;  %v643_v57 = vrot.slane %v1975_v27, 1 }
  0x1c   : > { %v444_v49 = vsel %vm408_vm1, %v439_v44, %v443_v45  ;;  %1306 = vmatprep.subr.bf16.mxu0 %v1876_v0  ;;  %v644_v58 = vrot.slane %v1983_v30, 1  ;;  %v458_v59 = vshrl.u32 %v2010_v52, 16  ;;  %v465_v63 = vshll.u32 %v1830_v54, 16  ;;  %v1838_v44 = vld [vmem:[%s1938_s27 + $0x68] ss:$0 sps:$4 sm:$0x11]  }
  0x1d   : > { %684 = vrot.lane.b32.xlu0 %v639_v23, %s1879_s9  ;;  %v456_v50 = vsel %vm408_vm1, %v451_v47, %v455_v48  ;;  %v462_v62 = vrot.slane %v460_v56, 1  ;;  %v472_v2 = vshll.u32 %v2032_v60, 16  ;;  %v646_v9 = vrot.slane %v2010_v52, 1  ;;  %v2123_v47 = vld [vmem:[%s1938_s27 + $0x6c] sm:$0xff]  }
  0x1e   : > { %766 = vrot.lane.b32.xlu1 %v432_v31, %s1881_s13  ;;  %v2045_v3 = vsel %vm633_vm0, %v643_v57, %v644_v58  ;;  %v467_v8 = vrot.slane %v465_v63, 1  ;;  %v470_v10 = vshrl.u32 %v2032_v60, 16  ;;  %v477_v12 = vshll.u32 %v1832_v1, 16 }
  0x1f   : > { %1307 = vmatpush1.bf16.msra.mxu0 %v1848_v53  ;;  %v463_v6 = vor.u32 %v462_v62, %v458_v59  ;;  %v474_v11 = vrot.slane %v472_v2, 1  ;;  %v484_v20 = vshll.u32 %v2067_v18, 16  ;;  %v649_v21 = vrot.slane %v2032_v60, 1  ;;  %v1843_v53 = vld [vmem:[%s1938_s27 + $0x74] ss:$0 sps:$4 sm:$0x11]  }
  0x20   : > { %1308 = vmatprep.subr.bf16.mxu0 %v1876_v0  ;;  %v479_v16 = vrot.slane %v477_v12, 1  ;;  %v650_v23 = vrot.slane %v1832_v1, 1  ;;  %v482_v24 = vshrl.u32 %v2067_v18, 16  ;;  %v489_v26 = vshll.u32 %v1834_v19, 16 }
  0x21   : > { %601 = vrot.lane.b32.xlu0 %v420_v43, %s1882_s14  ;;  %v468_v13 = vsel %vm408_vm1, %v463_v6, %v467_v8  ;;  %v475_v15 = vor.u32 %v474_v11, %v470_v10  ;;  %v486_v25 = vrot.slane %v484_v20, 1  ;;  %v496_v29 = vshll.u32 %v2079_v22, 16  ;;  %v2111_v43 = vld [vmem:[%s1938_s27 + $0x60] sm:$0xff]  }
  0x22   : > { %603 = vrot.lane.b32.xlu1 %v432_v31, %s1882_s14  ;;  %v2089_v30 = vsel %vm633_vm0, %v649_v21, %v650_v23  ;;  %v491_v32 = vrot.slane %v489_v26, 1  ;;  %v652_v33 = vrot.slane %v2067_v18, 1  ;;  %v653_v34 = vrot.slane %v1834_v19, 1  ;;  %v1849_v11 = vld [vmem:[%s1938_s27 + $0x80] ss:$0 sps:$4 sm:$0x11]  }
  0x23   : > { %1309 = vmatpush1.bf16.msra.mxu0 %v1850_v55  ;;  %v480_v17 = vsel %vm408_vm1, %v475_v15, %v479_v16  ;;  %v487_v31 = vor.u32 %v486_v25, %v482_v24  ;;  %v494_v35 = vshrl.u32 %v2079_v22, 16  ;;  %v498_v36 = vrot.slane %v496_v29, 1  ;;  %v2167_v15 = vld [vmem:[%s1938_s27 + $0x84] sm:$0xff]   ;;  %v2175_v24 = vld [vmem:[%s1938_s27 + $0x8c] ss:$0 sps:$4 sm:$0x11]  }
  0x24   : > { %1310 = vmatprep.subr.bf16.mxu0 %v1876_v0  ;;  %v647_v0 = vrot.slane %v1830_v54, 1  ;;  %v501_v37 = vshll.u32 %v1836_v28, 16  ;;  %v2101_v39 = vsel %vm633_vm0, %v652_v33, %v653_v34  ;;  %v508_v45 = vshll.u32 %v2111_v43, 16 }
  0x25   : > { %885 = vrot.lane.b32.xlu0 %v444_v49, %s1883_s15  ;;  %v492_v38 = vsel %vm408_vm1, %v487_v31, %v491_v32  ;;  %v499_v40 = vor.u32 %v498_v36, %v494_v35  ;;  %v656_v48 = vrot.slane %v1836_v28, 1  ;;  %v513_v51 = vshll.u32 %v1838_v44, 16 }
  0x26   : > { %803 = vrot.lane.b32.xlu1 %v642_v46, %s1880_s12  ;;  %v2057_v14 = vsel %vm633_vm0, %v646_v9, %v647_v0  ;;  %v503_v41 = vrot.slane %v501_v37, 1  ;;  %v520_v54 = vshll.u32 %v2123_v47, 16  ;;  %v658_v58 = vrot.slane %v2111_v43, 1  ;;  %v2155_v0 = vld [vmem:[%s1938_s27 + $0x78] sm:$0xff]  }
  0x27   : > { %1311 = vmatpush1.bf16.msra.mxu0 %v1851_v61  ;;  %v515_v57 = vrot.slane %v513_v51, 1  ;;  %v659_v59 = vrot.slane %v1838_v44, 1  ;;  %v518_v61 = vshrl.u32 %v2123_v47, 16  ;;  %v525_v63 = vshll.u32 %v1843_v53, 16 }
  0x28   : > { %v504_v42 = vsel %vm408_vm1, %v499_v40, %v503_v41  ;;  %v522_v62 = vrot.slane %v520_v54, 1  ;;  %v532_v12 = vshll.u32 %v2155_v0, 16  ;;  %v530_v19 = vshrl.u32 %v2155_v0, 16 }
  0x29   : > { %768 = vrot.lane.b32.xlu0 %v444_v49, %s1881_s13  ;;  %v2145_v2 = vsel %vm633_vm0, %v658_v58, %v659_v59  ;;  %v527_v8 = vrot.slane %v525_v63, 1  ;;  %v537_v21 = vshll.u32 %v1849_v11, 16  ;;  %v544_v25 = vshll.u32 %v2167_v15, 16  ;;  %v2213_v63 = vld [vmem:[%s1938_s27 + $0x90] sm:$0xff]  }
  0x2a   : > { %887 = vrot.lane.b32.xlu1 %v456_v50, %s1883_s15  ;;  %v523_v6 = vor.u32 %v522_v62, %v518_v61  ;;  %v534_v20 = vrot.slane %v532_v12, 1  ;;  %v664_v33 = vrot.slane %v2155_v0, 1  ;;  %v665_v34 = vrot.slane %v1849_v11, 1 }
  0x2b   : > { %v539_v31 = vrot.slane %v537_v21, 1  ;;  %v542_v35 = vshrl.u32 %v2167_v15, 16  ;;  %v546_v36 = vrot.slane %v544_v25, 1  ;;  %v549_v37 = vshll.u32 %v2175_v24, 16 }
  0x2c   : > { %v528_v9 = vsel %vm408_vm1, %v523_v6, %v527_v8  ;;  %v535_v29 = vor.u32 %v534_v20, %v530_v19  ;;  %v556_v11 = vshll.u32 %v2213_v63, 16  ;;  %v2232_v19 = vld [vmem:[%s1938_s27 + $0x9c] sm:$0xff]   ;;  %v668_v21 = vrot.slane %v2175_v24, 1 }
  0x2d   : > { %840 = vrot.lane.b32.xlu0 %v1975_v27, %s1878_s8  ;;  %v547_v44 = vor.u32 %v546_v36, %v542_v35  ;;  %v568_v24 = vshll.u32 %v2232_v19, 16 }
  0x2e   : > { %686 = vrot.lane.b32.xlu1 %v642_v46, %s1879_s9  ;;  %v655_v46 = vrot.slane %v2079_v22, 1  ;;  %v540_v40 = vsel %vm408_vm1, %v535_v29, %v539_v31  ;;  %v558_v25 = vrot.slane %v556_v11, 1 }
  0x30   : > { %v2133_v55 = vsel %vm633_vm0, %v655_v46, %v656_v48 }
  0x31   : > { %605 = vrot.lane.b32.xlu0 %v444_v49, %s1882_s14  ;;  %v506_v49 = vshrl.u32 %v2111_v43, 16 }
  0x32   : > { %770 = vrot.lane.b32.xlu1 %v456_v50, %s1881_s13 }
  0x35   : > { %723 = vrot.lane.b32.xlu0 %v1975_v27, %s1877_s30 }
  0x36   : > { %842 = vrot.lane.b32.xlu1 %v2010_v52, %s1878_s8 }
  0x39   : > { %805 = vrot.lane.b32.xlu0 %v2045_v3, %s1880_s12 }
  0x3a   : > { %607 = vrot.lane.b32.xlu1 %v456_v50, %s1882_s14  ;;  %v510_v50 = vrot.slane %v508_v45, 1  ;;  %v551_v45 = vrot.slane %v549_v37, 1 }
  0x3c   : > { %v511_v56 = vor.u32 %v510_v50, %v506_v49 }
  0x3d   : > { %889 = vrot.lane.b32.xlu0 %v468_v13, %s1883_s15 }
  0x3e   : > { %725 = vrot.lane.b32.xlu1 %v2010_v52, %s1877_s30  ;;  %v516_v1 = vsel %vm408_vm1, %v511_v56, %v515_v57 }
  0x41   : > { %688 = vrot.lane.b32.xlu0 %v2045_v3, %s1879_s9 }
  0x42   : > { %807 = vrot.lane.b32.xlu1 %v2057_v14, %s1880_s12 }
  0x45   : > { %772 = vrot.lane.b32.xlu0 %v468_v13, %s1881_s13 }
  0x46   : > { %891 = vrot.lane.b32.xlu1 %v480_v17, %s1883_s15 }
  0x49   : > { %844 = vrot.lane.b32.xlu0 %v2032_v60, %s1878_s8 }
  0x4a   : > { %690 = vrot.lane.b32.xlu1 %v2057_v14, %s1879_s9 }
  0x4d   : > { %609 = vrot.lane.b32.xlu0 %v468_v13, %s1882_s14  ;;  %v661_v13 = vrot.slane %v2123_v47, 1 }
  0x4e   : > { %774 = vrot.lane.b32.xlu1 %v480_v17, %s1881_s13 }
  0x51   : > { %727 = vrot.lane.b32.xlu0 %v2032_v60, %s1877_s30 }
  0x52   : > { %846 = vrot.lane.b32.xlu1 %v2067_v18, %s1878_s8 }
  0x55   : > { %809 = vrot.lane.b32.xlu0 %v2089_v30, %s1880_s12 }
  0x56   : > { %611 = vrot.lane.b32.xlu1 %v480_v17, %s1882_s14  ;;  %v662_v17 = vrot.slane %v1843_v53, 1  ;;  %v552_v53 = vsel %vm408_vm1, %v547_v44, %v551_v45  ;;  %v570_v44 = vrot.slane %v568_v24, 1 }
  0x58   : > { %v2179_v28 = vsel %vm633_vm0, %v661_v13, %v662_v17 }
  0x59   : > { %893 = vrot.lane.b32.xlu0 %v492_v38, %s1883_s15 }
  0x5a   : > { %729 = vrot.lane.b32.xlu1 %v2067_v18, %s1877_s30 }
  0x5d   : > { %692 = vrot.lane.b32.xlu0 %v2089_v30, %s1879_s9 }
  0x5e   : > { %811 = vrot.lane.b32.xlu1 %v2101_v39, %s1880_s12 }
  0x61   : > { %776 = vrot.lane.b32.xlu0 %v492_v38, %s1881_s13 }
  0x62   : > { %895 = vrot.lane.b32.xlu1 %v504_v42, %s1883_s15 }
  0x65   : > { %848 = vrot.lane.b32.xlu0 %v2079_v22, %s1878_s8 }
  0x66   : > { %694 = vrot.lane.b32.xlu1 %v2101_v39, %s1879_s9 }
  0x69   : > { %613 = vrot.lane.b32.xlu0 %v492_v38, %s1882_s14 }
  0x6a   : > { %778 = vrot.lane.b32.xlu1 %v504_v42, %s1881_s13 }
  0x6d   : > { %731 = vrot.lane.b32.xlu0 %v2079_v22, %s1877_s30 }
  0x6e   : > { %850 = vrot.lane.b32.xlu1 %v2111_v43, %s1878_s8 }
  0x71   : > { %813 = vrot.lane.b32.xlu0 %v2133_v55, %s1880_s12 }
  0x72   : > { %615 = vrot.lane.b32.xlu1 %v504_v42, %s1882_s14  ;;  %v2192_v42 = vsel %vm633_vm0, %v664_v33, %v665_v34 }
  0x75   : > { %897 = vrot.lane.b32.xlu0 %v516_v1, %s1883_s15 }
  0x76   : > { %733 = vrot.lane.b32.xlu1 %v2111_v43, %s1877_s30 }
  0x79   : > { %696 = vrot.lane.b32.xlu0 %v2133_v55, %s1879_s9 }
  0x7a   : > { %815 = vrot.lane.b32.xlu1 %v2145_v2, %s1880_s12 }
  0x7d   : > { %780 = vrot.lane.b32.xlu0 %v516_v1, %s1881_s13 }
  0x7e   : > { %899 = vrot.lane.b32.xlu1 %v528_v9, %s1883_s15 }
  0x81   : > { %852 = vrot.lane.b32.xlu0 %v2123_v47, %s1878_s8 }
  0x82   : > { %698 = vrot.lane.b32.xlu1 %v2145_v2, %s1879_s9 }
  0x84   : > { %v720_v10 = vpop.permute.xlu1 %719 }
  0x85   : > { %617 = vrot.lane.b32.xlu0 %v516_v1, %s1882_s14 }
  0x86   : > { %782 = vrot.lane.b32.xlu1 %v528_v9, %s1881_s13 }
  0x87   : > { %v683_v23 = vpop.permute.xlu0 %682 }
  0x88   : > { %v839_v16 = vpop.permute.xlu1 %838 }
  0x89   : > { %735 = vrot.lane.b32.xlu0 %v2123_v47, %s1877_s30 }
  0x8a   : > { %854 = vrot.lane.b32.xlu1 %v2155_v0, %s1878_s8 }
  0x8b   : > { %v802_v32 = vpop.permute.xlu0 %801 }
  0x8c   : > { %v722_v26 = vpop.permute.xlu1 %721 }
  0x8d   : > { %817 = vrot.lane.b32.xlu0 %v2179_v28, %s1880_s12 }
  0x8e   : > { %619 = vrot.lane.b32.xlu1 %v528_v9, %s1882_s14 }
  0x8f   : > { %v685_v41 = vpop.permute.xlu0 %684 }
  0x90   : > { %v767_v38 = vpop.permute.xlu1 %766 }
  0x91   : > { %901 = vrot.lane.b32.xlu0 %v540_v40, %s1883_s15 }
  0x92   : > { %737 = vrot.lane.b32.xlu1 %v2155_v0, %s1877_s30 }
  0x93   : > { %v602_v48 = vpop.permute.xlu0 %601 }
  0x94   : > { %v604_v46 = vpop.permute.xlu1 %603  ;;  %v922_v49 = vsel %vm920_vm2, %v1949_v5, %v602_v48 }
  0x95   : > { %v955_v50 = vsel %vm953_vm3, %v922_v49, %v683_v23  ;;  %v924_v51 = vsel %vm920_vm2, %v1944_v4, %v604_v46  ;;  %700 = vrot.lane.b32.xlu0 %v2179_v28, %s1879_s9  ;;  %v554_v23 = vshrl.u32 %v2213_v63, 16 }
  0x96   : > { %819 = vrot.lane.b32.xlu1 %v2192_v42, %s1880_s12  ;;  %v988_v54 = vsel %vm986_vm4, %v955_v50, %v720_v10  ;;  %v957_v58 = vsel %vm953_vm3, %v924_v51, %v685_v41  ;;  %v1855_v10 = vld [vmem:[%s1938_s27 + $0x98] ss:$0 sps:$4 sm:$0x11]   ;;  %v566_v41 = vshrl.u32 %v2232_v19, 16 }
  0x97   : > { %v886_v56 = vpop.permute.xlu0 %885  ;;  %v1021_v57 = vsel %vm1019_vm5, %v988_v54, %v767_v38  ;;  %v990_v1 = vsel %vm986_vm4, %v957_v58, %v722_v26  ;;  %v561_v26 = vshll.u32 %v1855_v10, 16  ;;  %v559_v35 = vor.u32 %v558_v25, %v554_v23  ;;  %v2300_v23 = vld [vmem:[%s1938_s27 + $0xb4] sm:$0xff]  }
  0x98   : > { %v804_v5 = vpop.permute.xlu1 %803  ;;  %v1054_v4 = vsel %vm1052_vm6, %v1021_v57, %v802_v32  ;;  %v2245_v32 = vld [vmem:[%s1938_s27 + $0xa4] ss:$0 sps:$4 sm:$0x11]   ;;  %v571_v54 = vor.u32 %v570_v44, %v566_v41 }
  0x99   : > { %784 = vrot.lane.b32.xlu0 %v540_v40, %s1881_s13  ;;  %v1087_v59 = vsel %vm1085_vm7, %v1054_v4, %v839_v16  ;;  %v563_v36 = vrot.slane %v561_v26, 1  ;;  %v573_v45 = vshll.u32 %v2245_v32, 16  ;;  %v674_v26 = vrot.slane %v2245_v32, 1 }
  0x9a   : > { %903 = vrot.lane.b32.xlu1 %v552_v53, %s1883_s15  ;;  %v1120_v61 = vsel %vm1118_vm8, %v1087_v59, %v886_v56  ;;  %v592_v32 = vshll.u32 %v2300_v23, 16 }
  0x9b   : > { %1327 = vmatmul.mubr.bf16.vlgmr.msra.gmra.mrb[0].mxu0 %v1120_v61  ;;  %v769_v6 = vpop.permute.xlu0 %768  ;;  %v564_v46 = vsel %vm408_vm1, %v559_v35, %v563_v36  ;;  %v2313_v36 = vld [vmem:[%s1938_s27 + $0xbc] ss:$0 sps:$4 sm:$0x11]  }
  0x9c   : > { %v888_v62 = vpop.permute.xlu1 %887  ;;  %v1023_v8 = vsel %vm1019_vm5, %v990_v1, %v769_v6  ;;  %1752 = vmatprep.mubr.msk.bf16.mxu0 %vm920_vm2, %v2045_v3  ;;  %v667_v3 = vrot.slane %v2167_v15, 1 }
  0x9d   : > { %856 = vrot.lane.b32.xlu0 %v2167_v15, %s1878_s8  ;;  %v1056_v12 = vsel %vm1052_vm6, %v1023_v8, %v804_v5  ;;  %v575_v5 = vrot.slane %v573_v45, 1  ;;  %v590_v45 = vshrl.u32 %v2300_v23, 16 }
  0x9e   : > { %702 = vrot.lane.b32.xlu1 %v2192_v42, %s1879_s9  ;;  %v2249_v33 = vsel %vm633_vm0, %v667_v3, %v668_v21  ;;  %v673_v21 = vrot.slane %v2232_v19, 1 }
  0x9f   : > { %v841_v13 = vpop.permute.xlu0 %840  ;;  %v576_v59 = vsel %vm408_vm1, %v571_v54, %v575_v5 }
  0xa0   : > { %v687_v9 = vpop.permute.xlu1 %686  ;;  %v1089_v16 = vsel %vm1085_vm7, %v1056_v12, %v841_v13 }
  0xa1   : > { %621 = vrot.lane.b32.xlu0 %v540_v40, %s1882_s14  ;;  %v1123_v17 = vsel %vm1118_vm8, %v1089_v16, %v888_v62  ;;  %v671_v40 = vrot.slane %v1855_v10, 1 }
  0xa2   : > { %786 = vrot.lane.b32.xlu1 %v552_v53, %s1881_s13 }
  0xa3   : > { %1335 = vmatmul.mubr.bf16.gmra.mrb[4].mxu0 %v1123_v17  ;;  %v606_v29 = vpop.permute.xlu0 %605 }
  0xa4   : > { %v771_v20 = vpop.permute.xlu1 %770  ;;  %v926_v31 = vsel %vm920_vm2, %v1954_v7, %v606_v29  ;;  %1753 = vmatprep.mubr.msk.bf16.mxu0 %vm920_vm2, %v2057_v14  ;;  %v670_v14 = vrot.slane %v2213_v63, 1 }
  0xa5   : > { %739 = vrot.lane.b32.xlu0 %v2167_v15, %s1877_s30  ;;  %v959_v7 = vsel %vm953_vm3, %v926_v31, %v687_v9  ;;  %v2283_v9 = vld [vmem:[%s1938_s27 + $0xa8] sm:$0xff]  }
  0xa6   : > { %858 = vrot.lane.b32.xlu1 %v2213_v63, %s1878_s8  ;;  %v580_v13 = vshll.u32 %v2283_v9, 16  ;;  %v578_v29 = vshrl.u32 %v2283_v9, 16  ;;  %v676_v41 = vrot.slane %v2283_v9, 1 }
  0xa7   : > { %v724_v37 = vpop.permute.xlu0 %723 }
  0xa8   : > { %v843_v34 = vpop.permute.xlu1 %842  ;;  %v992_v38 = vsel %vm986_vm4, %v959_v7, %v724_v37  ;;  %v582_v31 = vrot.slane %v580_v13, 1  ;;  %v2317_v7 = vsel %vm633_vm0, %v673_v21, %v674_v26  ;;  %v679_v26 = vrot.slane %v2300_v23, 1 }
  0xa9   : > { %821 = vrot.lane.b32.xlu0 %v2249_v33, %s1880_s12  ;;  %v1025_v49 = vsel %vm1019_vm5, %v992_v38, %v771_v20 }
  0xaa   : > { %623 = vrot.lane.b32.xlu1 %v552_v53, %s1882_s14  ;;  %v2266_v53 = vsel %vm633_vm0, %v670_v14, %v671_v40  ;;  %v583_v38 = vor.u32 %v582_v31, %v578_v29  ;;  %v2365_v29 = vld [vmem:[%s1938_s27 + $0xcc] sm:$0xff]  }
  0xab   : > { %v806_v50 = vpop.permute.xlu0 %805 }
  0xac   : > { %v608_v48 = vpop.permute.xlu1 %607  ;;  %v1058_v51 = vsel %vm1052_vm6, %v1025_v49, %v806_v50 }
  0xad   : > { %905 = vrot.lane.b32.xlu0 %v564_v46, %s1883_s15  ;;  %v1091_v57 = vsel %vm1085_vm7, %v1058_v51, %v843_v34  ;;  %v928_v62 = vsel %vm920_vm2, %v1975_v27, %v608_v48  ;;  %v597_v48 = vshll.u32 %v2313_v36, 16 }
  0xae   : > { %741 = vrot.lane.b32.xlu1 %v2213_v63, %s1877_s30 }
  0xaf   : > { %v890_v58 = vpop.permute.xlu0 %889 }
  0xb0   : > { %v726_v56 = vpop.permute.xlu1 %725  ;;  %v1126_v4 = vsel %vm1118_vm8, %v1091_v57, %v890_v58  ;;  %v599_v58 = vrot.slane %v597_v48, 1  ;;  %v874_v48 = vshrl.u32 %v2365_v29, 16 }
  0xb1   : > { %704 = vrot.lane.b32.xlu0 %v2249_v33, %s1879_s9  ;;  %1343 = vmatmul.mubr.bf16.gmra.mrb[8].mxu0 %v1126_v4 }
  0xb2   : > { %823 = vrot.lane.b32.xlu1 %v2266_v53, %s1880_s12  ;;  %1754 = vmatprep.mubr.msk.bf16.mxu0 %vm920_vm2, %v2089_v30  ;;  %v1859_v30 = vld [vmem:[%s1938_s27 + $0xb0] ss:$0 sps:$4 sm:$0x11]  }
  0xb3   : > { %v689_v1 = vpop.permute.xlu0 %688  ;;  %v585_v24 = vshll.u32 %v1859_v30, 16  ;;  %v677_v44 = vrot.slane %v1859_v30, 1 }
  0xb4   : > { %v808_v61 = vpop.permute.xlu1 %807  ;;  %v961_v6 = vsel %vm953_vm3, %v928_v62, %v689_v1 }
  0xb5   : > { %788 = vrot.lane.b32.xlu0 %v564_v46, %s1881_s13  ;;  %v994_v10 = vsel %vm986_vm4, %v961_v6, %v726_v56  ;;  %v587_v14 = vrot.slane %v585_v24, 1  ;;  %v2334_v56 = vsel %vm633_vm0, %v676_v41, %v677_v44  ;;  %v680_v24 = vrot.slane %v2313_v36, 1 }
  0xb6   : > { %907 = vrot.lane.b32.xlu1 %v576_v59, %s1883_s15 }
  0xb7   : > { %v773_v11 = vpop.permute.xlu0 %772  ;;  %v588_v49 = vsel %vm408_vm1, %v583_v38, %v587_v14  ;;  %v2376_v14 = vld [vmem:[%s1938_s27 + $0xd4] ss:$0 sps:$4 sm:$0x11]   ;;  %v2380_v36 = vsel %vm633_vm0, %v679_v26, %v680_v24 }
  0xb8   : > { %v892_v8 = vpop.permute.xlu1 %891  ;;  %v1027_v12 = vsel %vm1019_vm5, %v994_v10, %v773_v11 }
  0xb9   : > { %860 = vrot.lane.b32.xlu0 %v2232_v19, %s1878_s8  ;;  %v1060_v16 = vsel %vm1052_vm6, %v1027_v12, %v808_v61 }
  0xba   : > { %706 = vrot.lane.b32.xlu1 %v2266_v53, %s1879_s9 }
  0xbb   : > { %v845_v17 = vpop.permute.xlu0 %844 }
  0xbc   : > { %v691_v27 = vpop.permute.xlu1 %690  ;;  %v1093_v3 = vsel %vm1085_vm7, %v1060_v16, %v845_v17 }
  0xbd   : > { %625 = vrot.lane.b32.xlu0 %v564_v46, %s1882_s14  ;;  %v1129_v20 = vsel %vm1118_vm8, %v1093_v3, %v892_v8  ;;  %v594_v46 = vrot.slane %v592_v32, 1 }
  0xbe   : > { %790 = vrot.lane.b32.xlu1 %v576_v59, %s1881_s13  ;;  %1351 = vmatmul.mubr.bf16.gmra.mrb[12].mxu0 %v1129_v20 }
  0xbf   : > { %v610_v34 = vpop.permute.xlu0 %609  ;;  %1755 = vmatprep.mubr.msk.bf16.mxu0 %vm920_vm2, %v2101_v39  ;;  %v595_v57 = vor.u32 %v594_v46, %v590_v45 }
  0xc0   : > { %v775_v25 = vpop.permute.xlu1 %774  ;;  %v930_v35 = vsel %vm920_vm2, %v2010_v52, %v610_v34 }
  0xc1   : > { %743 = vrot.lane.b32.xlu0 %v2232_v19, %s1877_s30  ;;  %v963_v39 = vsel %vm953_vm3, %v930_v35, %v691_v27  ;;  %v600_v1 = vsel %vm408_vm1, %v595_v57, %v599_v58  ;;  %v1862_v27 = vld [vmem:[%s1938_s27 + $0xc0] sm:$0xff]  }
  0xc2   : > { %862 = vrot.lane.b32.xlu1 %v2283_v9, %s1878_s8  ;;  %v757_v17 = vshll.u32 %v1862_v27, 16  ;;  %v755_v34 = vshrl.u32 %v1862_v27, 16  ;;  %v798_v45 = vrot.slane %v1862_v27, 1 }
  0xc3   : > { %v728_v40 = vpop.permute.xlu0 %727 }
  0xc4   : > { %v847_v37 = vpop.permute.xlu1 %846  ;;  %v996_v52 = vsel %vm986_vm4, %v963_v39, %v728_v40  ;;  %v759_v35 = vrot.slane %v757_v17, 1  ;;  %v876_v39 = vshll.u32 %v2365_v29, 16 }
  0xc5   : > { %825 = vrot.lane.b32.xlu0 %v2317_v7, %s1880_s12  ;;  %v1029_v51 = vsel %vm1019_vm5, %v996_v52, %v775_v25 }
  0xc6   : > { %627 = vrot.lane.b32.xlu1 %v576_v59, %s1882_s14  ;;  %v760_v52 = vor.u32 %v759_v35, %v755_v34 }
  0xc7   : > { %v810_v54 = vpop.permute.xlu0 %809 }
  0xc8   : > { %v612_v50 = vpop.permute.xlu1 %611  ;;  %v1062_v5 = vsel %vm1052_vm6, %v1029_v51, %v810_v54 }
  0xc9   : > { %909 = vrot.lane.b32.xlu0 %v588_v49, %s1883_s15  ;;  %v1095_v59 = vsel %vm1085_vm7, %v1062_v5, %v847_v37  ;;  %v932_v8 = vsel %vm920_vm2, %v2032_v60, %v612_v50  ;;  %v881_v50 = vshll.u32 %v2376_v14, 16 }
  0xca   : > { %745 = vrot.lane.b32.xlu1 %v2283_v9, %s1877_s30 }
  0xcb   : > { %v894_v61 = vpop.permute.xlu0 %893 }
  0xcc   : > { %v730_v4 = vpop.permute.xlu1 %729  ;;  %v1132_v62 = vsel %vm1118_vm8, %v1095_v59, %v894_v61  ;;  %v883_v61 = vrot.slane %v881_v50, 1 }
  0xcd   : > { %708 = vrot.lane.b32.xlu0 %v2317_v7, %s1879_s9  ;;  %1359 = vmatmul.mubr.bf16.gmra.mrb[16].mxu0 %v1132_v62 }
  0xce   : > { %827 = vrot.lane.b32.xlu1 %v2334_v56, %s1880_s12  ;;  %1756 = vmatprep.mubr.msk.bf16.mxu0 %vm920_vm2, %v2133_v55  ;;  %v1863_v55 = vld [vmem:[%s1938_s27 + $0xc8] ss:$0 sps:$4 sm:$0x11]  }
  0xcf   : > { %v693_v10 = vpop.permute.xlu0 %692  ;;  %v762_v32 = vshll.u32 %v1863_v55, 16  ;;  %v799_v46 = vrot.slane %v1863_v55, 1 }
  0xd0   : > { %v812_v6 = vpop.permute.xlu1 %811  ;;  %v965_v11 = vsel %vm953_vm3, %v932_v8, %v693_v10 }
  0xd1   : > { %792 = vrot.lane.b32.xlu0 %v588_v49, %s1881_s13  ;;  %v998_v30 = vsel %vm986_vm4, %v965_v11, %v730_v4  ;;  %v764_v41 = vrot.slane %v762_v32, 1  ;;  %v2395_v4 = vsel %vm633_vm0, %v798_v45, %v799_v46 }
  0xd2   : > { %911 = vrot.lane.b32.xlu1 %v600_v1, %s1883_s15 }
  0xd3   : > { %v777_v13 = vpop.permute.xlu0 %776  ;;  %v765_v51 = vsel %vm408_vm1, %v760_v52, %v764_v41 }
  0xd4   : > { %v896_v12 = vpop.permute.xlu1 %895  ;;  %v1031_v16 = vsel %vm1019_vm5, %v998_v30, %v777_v13 }
  0xd5   : > { %864 = vrot.lane.b32.xlu0 %v2300_v23, %s1878_s8  ;;  %v1064_v3 = vsel %vm1052_vm6, %v1031_v16, %v812_v6 }
  0xd6   : > { %710 = vrot.lane.b32.xlu1 %v2334_v56, %s1879_s9 }
  0xd7   : > { %v849_v20 = vpop.permute.xlu0 %848 }
  0xd8   : > { %v695_v60 = vpop.permute.xlu1 %694  ;;  %v1097_v21 = vsel %vm1085_vm7, %v1064_v3, %v849_v20 }
  0xd9   : > { %629 = vrot.lane.b32.xlu0 %v588_v49, %s1882_s14  ;;  %v1135_v25 = vsel %vm1118_vm8, %v1097_v21, %v896_v12  ;;  %v878_v49 = vrot.slane %v876_v39, 1 }
  0xda   : > { %794 = vrot.lane.b32.xlu1 %v600_v1, %s1881_s13  ;;  %1367 = vmatmul.mubr.bf16.gmra.mrb[20].mxu0 %v1135_v25 }
  0xdb   : > { %v614_v37 = vpop.permute.xlu0 %613  ;;  %1757 = vmatprep.mubr.msk.bf16.mxu0 %vm920_vm2, %v2145_v2  ;;  %v879_v59 = vor.u32 %v878_v49, %v874_v48 }
  0xdc   : > { %v779_v31 = vpop.permute.xlu1 %778  ;;  %v934_v38 = vsel %vm920_vm2, %v2067_v18, %v614_v37 }
  0xdd   : > { %747 = vrot.lane.b32.xlu0 %v2300_v23, %s1877_s30  ;;  %v967_v2 = vsel %vm953_vm3, %v934_v38, %v695_v60  ;;  %v884_v10 = vsel %vm408_vm1, %v879_v59, %v883_v61 }
  0xde   : > { %866 = vrot.lane.b32.xlu1 %v1862_v27, %s1878_s8 }
  0xdf   : > { %v732_v44 = vpop.permute.xlu0 %731 }
  0xe0   : > { %v851_v40 = vpop.permute.xlu1 %850  ;;  %v1000_v18 = vsel %vm986_vm4, %v967_v2, %v732_v44 }
  0xe1   : > { %829 = vrot.lane.b32.xlu0 %v2380_v36, %s1880_s12  ;;  %v1033_v5 = vsel %vm1019_vm5, %v1000_v18, %v779_v31 }
  0xe2   : > { %631 = vrot.lane.b32.xlu1 %v600_v1, %s1882_s14 }
  0xe3   : > { %v814_v57 = vpop.permute.xlu0 %813 }
  0xe4   : > { %v616_v54 = vpop.permute.xlu1 %615  ;;  %v1066_v58 = vsel %vm1052_vm6, %v1033_v5, %v814_v57 }
  0xe5   : > { %913 = vrot.lane.b32.xlu0 %v765_v51, %s1883_s15  ;;  %v1099_v1 = vsel %vm1085_vm7, %v1066_v58, %v851_v40  ;;  %v936_v12 = vsel %vm920_vm2, %v2079_v22, %v616_v54 }
  0xe6   : > { %749 = vrot.lane.b32.xlu1 %v1862_v27, %s1877_s30 }
  0xe7   : > { %v898_v6 = vpop.permute.xlu0 %897 }
  0xe8   : > { %v734_v62 = vpop.permute.xlu1 %733  ;;  %v1138_v8 = vsel %vm1118_vm8, %v1099_v1, %v898_v6 }
  0xe9   : > { %712 = vrot.lane.b32.xlu0 %v2380_v36, %s1879_s9  ;;  %1375 = vmatmul.mubr.bf16.gmra.mrb[24].mxu0 %v1138_v8 }
  0xea   : > { %831 = vrot.lane.b32.xlu1 %v2395_v4, %s1880_s12  ;;  %1758 = vmatprep.mubr.msk.bf16.mxu0 %vm920_vm2, %v2179_v28 }
  0xeb   : > { %v697_v27 = vpop.permute.xlu0 %696 }
  0xec   : > { %v816_v11 = vpop.permute.xlu1 %815  ;;  %v969_v30 = vsel %vm953_vm3, %v936_v12, %v697_v27 }
  0xed   : > { %796 = vrot.lane.b32.xlu0 %v765_v51, %s1881_s13  ;;  %v1002_v16 = vsel %vm986_vm4, %v969_v30, %v734_v62  ;;  %s1802_s13 = smul.u32 48, %s2614_s19 }
  0xee   : > { %915 = vrot.lane.b32.xlu1 %v884_v10, %s1883_s15 }
  0xef   : > { %v781_v60 = vpop.permute.xlu0 %780  ;;  %s224_s16 = scalar_lea.vmem %s2612_s5, %s1802_s13 }
  0xf0   : > { %v900_v13 = vpop.permute.xlu1 %899  ;;  %v1035_v55 = vsel %vm1019_vm5, %v1002_v16, %v781_v60 }
  0xf1   : > { %868 = vrot.lane.b32.xlu0 %v2365_v29, %s1878_s8  ;;  %v1068_v17 = vsel %vm1052_vm6, %v1035_v55, %v816_v11 }
  0xf3   : > { %v853_v22 = vpop.permute.xlu0 %852 }
  0xf4   : > { %v699_v28 = vpop.permute.xlu1 %698  ;;  %v1101_v3 = vsel %vm1085_vm7, %v1068_v17, %v853_v22 }
  0xf5   : > { %v1141_v20 = vsel %vm1118_vm8, %v1101_v3, %v900_v13 }
  0xf6   : > { %1383 = vmatmul.mubr.bf16.gmra.mrb[28].mxu0 %v1141_v20 }
  0xf7   : > { %v618_v25 = vpop.permute.xlu0 %617  ;;  %1759 = vmatprep.mubr.msk.bf16.mxu0 %vm920_vm2, %v2192_v42 }
  0xf8   : > { %v783_v21 = vpop.permute.xlu1 %782  ;;  %v938_v26 = vsel %vm920_vm2, %v2111_v43, %v618_v25 }
  0xf9   : > { %v971_v24 = vsel %vm953_vm3, %v938_v26, %v699_v28 }
  0xfb   : > { %v736_v34 = vpop.permute.xlu0 %735 }
  0xfc   : > { %v855_v31 = vpop.permute.xlu1 %854  ;;  %v1004_v35 = vsel %vm986_vm4, %v971_v24, %v736_v34 }
  0xfd   : > { %v1037_v37 = vsel %vm1019_vm5, %v1004_v35, %v783_v21 }
  0xff   : > { %v818_v38 = vpop.permute.xlu0 %817 }
 0x100   : > { %v620_v32 = vpop.permute.xlu1 %619  ;;  %v1070_v39 = vsel %vm1052_vm6, %v1037_v37, %v818_v38 }
 0x101   : > { %v1103_v52 = vsel %vm1085_vm7, %v1070_v39, %v855_v31  ;;  %v940_v2 = vsel %vm920_vm2, %v2123_v47, %v620_v32 }
 0x103   : > { %v902_v41 = vpop.permute.xlu0 %901 }
 0x104   : > { %v738_v40 = vpop.permute.xlu1 %737  ;;  %v1144_v42 = vsel %vm1118_vm8, %v1103_v52, %v902_v41 }
 0x105   : > { %1391 = vmatmul.mubr.bf16.gmra.mrb[32].mxu0 %v1144_v42 }
 0x106   : > { %1760 = vmatprep.mubr.msk.bf16.mxu0 %vm920_vm2, %v2249_v33 }
 0x107   : > { %v701_v44 = vpop.permute.xlu0 %700 }
 0x108   : > { %v820_v43 = vpop.permute.xlu1 %819  ;;  %v973_v18 = vsel %vm953_vm3, %v940_v2, %v701_v44 }
 0x109   : > { %v1006_v46 = vsel %vm986_vm4, %v973_v18, %v738_v40 }
 0x10b   : > { %v785_v48 = vpop.permute.xlu0 %784 }
 0x10c   : > { %v904_v45 = vpop.permute.xlu1 %903  ;;  %v1039_v49 = vsel %vm1019_vm5, %v1006_v46, %v785_v48 }
 0x10d   : > { %v1072_v51 = vsel %vm1052_vm6, %v1039_v49, %v820_v43 }
 0x10f   : > { %v857_v54 = vpop.permute.xlu0 %856 }
 0x110   : > { %v703_v50 = vpop.permute.xlu1 %702  ;;  %v1105_v5 = vsel %vm1085_vm7, %v1072_v51, %v857_v54 }
 0x111   : > { %v1147_v33 = vsel %vm1118_vm8, %v1105_v5, %v904_v45 }
 0x112   : > { %1399 = vmatmul.mubr.bf16.gmra.mrb[36].mxu0 %v1147_v33 }
 0x113   : > { %v622_v47 = vpop.permute.xlu0 %621  ;;  %1761 = vmatprep.mubr.msk.bf16.mxu0 %vm920_vm2, %v2266_v53 }
 0x114   : > { %v787_v57 = vpop.permute.xlu1 %786  ;;  %v942_v58 = vsel %vm920_vm2, %v2155_v0, %v622_v47 }
 0x115   : > { %v975_v61 = vsel %vm953_vm3, %v942_v58, %v703_v50 }
 0x117   : > { %v740_v62 = vpop.permute.xlu0 %739 }
 0x118   : > { %v859_v59 = vpop.permute.xlu1 %858  ;;  %v1008_v1 = vsel %vm986_vm4, %v975_v61, %v740_v62 }
 0x119   : > { %v1041_v8 = vsel %vm1019_vm5, %v1008_v1, %v787_v57 }
 0x11b   : > { %v822_v10 = vpop.permute.xlu0 %821 }
 0x11c   : > { %v624_v6 = vpop.permute.xlu1 %623  ;;  %v1074_v11 = vsel %vm1052_vm6, %v1041_v8, %v822_v10  ;;  %v918_v8 = vrot.slane %v2376_v14, 1 }
 0x11d   : > { %v1107_v27 = vsel %vm1085_vm7, %v1074_v11, %v859_v59  ;;  %v944_v13 = vsel %vm920_vm2, %v2167_v15, %v624_v6  ;;  %v917_v6 = vrot.slane %v2365_v29, 1 }
 0x11f   : > { %v906_v30 = vpop.permute.xlu0 %905 }
 0x120   : > { %v742_v12 = vpop.permute.xlu1 %741  ;;  %v1150_v53 = vsel %vm1118_vm8, %v1107_v27, %v906_v30 }
 0x121   : > { %1407 = vmatmul.mubr.bf16.gmra.mrb[40].mxu0 %v1150_v53 }
 0x122   : > { %1762 = vmatprep.mubr.msk.bf16.mxu0 %vm920_vm2, %v2317_v7 }
 0x123   : > { %v705_v16 = vpop.permute.xlu0 %704 }
 0x124   : > { %v824_v0 = vpop.permute.xlu1 %823  ;;  %v977_v60 = vsel %vm953_vm3, %v944_v13, %v705_v16 }
 0x125   : > { %v1010_v28 = vsel %vm986_vm4, %v977_v60, %v742_v12  ;;  %v919_v12 = vsel %vm633_vm0, %v917_v6, %v918_v8 }
 0x127   : > { %v789_v17 = vpop.permute.xlu0 %788 }
 0x128   : > { %v908_v55 = vpop.permute.xlu1 %907  ;;  %v1043_v22 = vsel %vm1019_vm5, %v1010_v28, %v789_v17 }
 0x129   : > { %v1076_v20 = vsel %vm1052_vm6, %v1043_v22, %v824_v0 }
 0x12b   : > { %v861_v21 = vpop.permute.xlu0 %860 }
 0x12c   : > { %v707_v3 = vpop.permute.xlu1 %706  ;;  %v1109_v25 = vsel %vm1085_vm7, %v1076_v20, %v861_v21 }
 0x12d   : > { %v1153_v7 = vsel %vm1118_vm8, %v1109_v25, %v908_v55 }
 0x12e   : > { %1415 = vmatmul.mubr.bf16.gmra.mrb[44].mxu0 %v1153_v7 }
 0x12f   : > { %v626_v15 = vpop.permute.xlu0 %625  ;;  %1763 = vmatprep.mubr.msk.bf16.mxu0 %vm920_vm2, %v2334_v56 }
 0x130   : > { %v791_v26 = vpop.permute.xlu1 %790  ;;  %v946_v31 = vsel %vm920_vm2, %v2213_v63, %v626_v15 }
 0x131   : > { %v979_v34 = vsel %vm953_vm3, %v946_v31, %v707_v3 }
 0x133   : > { %v744_v35 = vpop.permute.xlu0 %743 }
 0x134   : > { %v863_v24 = vpop.permute.xlu1 %862  ;;  %v1012_v32 = vsel %vm986_vm4, %v979_v34, %v744_v35 }
 0x135   : > { %v1045_v38 = vsel %vm1019_vm5, %v1012_v32, %v791_v26 }
 0x137   : > { %v826_v39 = vpop.permute.xlu0 %825 }
 0x138   : > { %v628_v37 = vpop.permute.xlu1 %627  ;;  %v1078_v40 = vsel %vm1052_vm6, %v1045_v38, %v826_v39 }
 0x139   : > { %v1111_v41 = vsel %vm1085_vm7, %v1078_v40, %v863_v24  ;;  %v948_v43 = vsel %vm920_vm2, %v2232_v19, %v628_v37 }
 0x13b   : > { %v910_v42 = vpop.permute.xlu0 %909 }
 0x13c   : > { %v746_v52 = vpop.permute.xlu1 %745  ;;  %v1156_v56 = vsel %vm1118_vm8, %v1111_v41, %v910_v42 }
 0x13d   : > { %1423 = vmatmul.mubr.bf16.gmra.mrb[48].mxu0 %v1156_v56 }
 0x13e   : > { %1764 = vmatprep.mubr.msk.bf16.mxu0 %vm920_vm2, %v2380_v36 }
 0x13f   : > { %v709_v2 = vpop.permute.xlu0 %708 }
 0x140   : > { %v828_v63 = vpop.permute.xlu1 %827  ;;  %v981_v44 = vsel %vm953_vm3, %v948_v43, %v709_v2 }
 0x141   : > { %v1014_v45 = vsel %vm986_vm4, %v981_v44, %v746_v52 }
 0x143   : > { %v793_v46 = vpop.permute.xlu0 %792 }
 0x144   : > { %v912_v18 = vpop.permute.xlu1 %911  ;;  %v1047_v48 = vsel %vm1019_vm5, %v1014_v45, %v793_v46 }
 0x145   : > { %v1080_v50 = vsel %vm1052_vm6, %v1047_v48, %v828_v63 }
 0x147   : > { %v865_v51 = vpop.permute.xlu0 %864 }
 0x148   : > { %v711_v49 = vpop.permute.xlu1 %710  ;;  %v1113_v54 = vsel %vm1085_vm7, %v1080_v50, %v865_v51 }
 0x149   : > { %v1159_v36 = vsel %vm1118_vm8, %v1113_v54, %v912_v18 }
 0x14a   : > { %1431 = vmatmul.mubr.bf16.gmra.mrb[52].mxu0 %v1159_v36 }
 0x14b   : > { %v630_v19 = vpop.permute.xlu0 %629  ;;  %1765 = vmatprep.mubr.msk.bf16.mxu0 %vm920_vm2, %v2395_v4 }
 0x14c   : > { %v795_v5 = vpop.permute.xlu1 %794  ;;  %v950_v33 = vsel %vm920_vm2, %v2283_v9, %v630_v19 }
 0x14d   : > { %v983_v47 = vsel %vm953_vm3, %v950_v33, %v711_v49 }
 0x14f   : > { %v748_v58 = vpop.permute.xlu0 %747 }
 0x150   : > { %v867_v57 = vpop.permute.xlu1 %866  ;;  %v1016_v59 = vsel %vm986_vm4, %v983_v47, %v748_v58 }
 0x151   : > { %v1049_v62 = vsel %vm1019_vm5, %v1016_v59, %v795_v5 }
 0x153   : > { %v830_v1 = vpop.permute.xlu0 %829 }
 0x154   : > { %v632_v61 = vpop.permute.xlu1 %631  ;;  %v1082_v10 = vsel %vm1052_vm6, %v1049_v62, %v830_v1 }
 0x155   : > { %v1115_v11 = vsel %vm1085_vm7, %v1082_v10, %v867_v57  ;;  %v952_v30 = vsel %vm920_vm2, %v2300_v23, %v632_v61  ;;  %v2503_v23 = vld [vmem:[%s2609_s2] ss:$0 sm:$0xff] }
 0x157   : > { %v914_v9 = vpop.permute.xlu0 %913 }
 0x158   : > { %v750_v4 = vpop.permute.xlu1 %749  ;;  %v1162_v27 = vsel %vm1118_vm8, %v1115_v11, %v914_v9 }
 0x159   : > { %1439 = vmatmul.mubr.bf16.gmra.mrb[56].mxu0 %v1162_v27 }
 0x15a   : > { %1766 = vmatprep.mubr.msk.bf16.mxu0 %vm920_vm2, %v919_v12 }
 0x15b   : > { %v713_v53 = vpop.permute.xlu0 %712 }
 0x15c   : > { %v985_v29 = vsel %vm953_vm3, %v952_v30, %v713_v53  ;;  %v832_v14 = vpop.permute.xlu1 %831 }
 0x15d   : > { %v1018_v0 = vsel %vm986_vm4, %v985_v29, %v750_v4 }
 0x15f   : > { %v797_v13 = vpop.permute.xlu0 %796 }
 0x160   : > { %v1051_v16 = vsel %vm1019_vm5, %v1018_v0, %v797_v13  ;;  %v916_v60 = vpop.permute.xlu1 %915 }
 0x161   : > { %v1084_v55 = vsel %vm1052_vm6, %v1051_v16, %v832_v14 }
 0x163   : > { %v869_v28 = vpop.permute.xlu0 %868 }
 0x164   : > { %v1117_v17 = vsel %vm1085_vm7, %v1084_v55, %v869_v28 }
 0x165   : > { %v1165_v22 = vsel %vm1118_vm8, %v1117_v17, %v916_v60 }
 0x166   : > { %1447 = vmatmul.mubr.bf16.gmra.mrb[60].mxu0 %v1165_v22 }
 0x16e   : > { %v1328_v3 = vpop.f32.mrb[0].mxu0 }
 0x16f   : > { %v1329_v20 = vadd.f32 %v2503_v23, %v1328_v3  ;;  %v1330_v21 = vpop.f32.mrb[1].mxu0  ;;  %v2536_v3 = vld [vmem:[%s2610_s3] sm:$0xff]  }
 0x170   : > { %v1331_v25 = vpop.f32.mrb[2].mxu0  ;;  %1789 = vmatprep.mubr.msk.bf16.mxu1 %vm920_vm2, %v2536_v3 }
 0x171   : > { %v1332_v7 = vadd.f32 %v2503_v23, %v1331_v25  ;;  %v1333_v26 = vpop.f32.mrb[3].mxu0  ;;  %v1455_v15 = vmax.f32 %v1329_v20, 0.0 }
 0x173   : > { %v1456_v31 = vmax.f32 %v1332_v7, 0.0 }
 0x175   : > { %v2507_v24 = vpack.c.bf16 %v1456_v31, %v1455_v15 }
 0x176   : > { %v1336_v34 = vpop.f32.mrb[4].mxu0 }
 0x177   : > { %v1337_v35 = vadd.f32 %v2503_v23, %v1336_v34  ;;  %v1338_v32 = vpop.f32.mrb[5].mxu0 }
 0x178   : > { %v1339_v37 = vpop.f32.mrb[6].mxu0  ;;  %v1506_v32 = vld [vmem:[%s2611_s4] sm:$0xff] }
 0x179   : > { %v1340_v38 = vadd.f32 %v2503_v23, %v1339_v37  ;;  %v1341_v39 = vpop.f32.mrb[7].mxu0  ;;  %v1457_v40 = vmax.f32 %v1337_v35, 0.0  ;;  %v1507_v37 = vld [vmem:[%s2611_s4 + $0x8] sm:$0xff]  ;;  %1511 = vperm.xlu0 %1819, %v1506_v32  }
 0x17a   : > { %1516 = vperm.xlu1 %1820, %v1507_v37  }
 0x17b   : > { %v1458_v52 = vmax.f32 %v1340_v38, 0.0  ;;  %v1508_v38 = vld [vmem:[%s2611_s4 + $0x10] sm:$0xff] }
 0x17d   : > { %v2511_v41 = vpack.c.bf16 %v1458_v52, %v1457_v40 }
 0x17e   : > { %1521 = vperm.xlu1 %1820, %v1508_v38  }
 0x184   : > { %v1344_v42 = vpop.f32.mrb[8].mxu0 }
 0x185   : > { %v1345_v56 = vadd.f32 %v2503_v23, %v1344_v42  ;;  %v1346_v63 = vpop.f32.mrb[9].mxu0 }
 0x186   : > { %v1347_v43 = vpop.f32.mrb[10].mxu0 }
 0x187   : > { %v1348_v2 = vadd.f32 %v2503_v23, %v1347_v43  ;;  %v1349_v44 = vpop.f32.mrb[11].mxu0  ;;  %v1459_v18 = vmax.f32 %v1345_v56, 0.0 }
 0x189   : > { %v1460_v45 = vmax.f32 %v1348_v2, 0.0 }
 0x18b   : > { %v2515_v46 = vpack.c.bf16 %v1460_v45, %v1459_v18  ;;  %v1539_v18 = vsel %vm920_vm2, %v2507_v24, 0 }
 0x191   : > { %v1352_v48 = vpop.f32.mrb[12].mxu0 }
 0x192   : > { %v1353_v49 = vadd.f32 %v2503_v23, %v1352_v48  ;;  %v1354_v50 = vpop.f32.mrb[13].mxu0 }
 0x193   : > { %v1355_v51 = vpop.f32.mrb[14].mxu0 }
 0x194   : > { %v1356_v54 = vadd.f32 %v2503_v23, %v1355_v51  ;;  %v1357_v36 = vpop.f32.mrb[15].mxu0  ;;  %v1461_v5 = vmax.f32 %v1353_v49, 0.0 }
 0x196   : > { %v1462_v19 = vmax.f32 %v1356_v54, 0.0 }
 0x198   : > { %v2519_v33 = vpack.c.bf16 %v1462_v19, %v1461_v5 }
 0x1a0   : > { %v1360_v57 = vpop.f32.mrb[16].mxu0 }
 0x1a1   : > { %v1361_v47 = vadd.f32 %v2503_v23, %v1360_v57  ;;  %v1362_v58 = vpop.f32.mrb[17].mxu0  ;;  %v1542_v57 = vsel %vm920_vm2, %v2511_v41, 0 }
 0x1a2   : > { %v1363_v59 = vpop.f32.mrb[18].mxu0 }
 0x1a3   : > { %v1364_v61 = vadd.f32 %v2503_v23, %v1363_v59  ;;  %v1365_v62 = vpop.f32.mrb[19].mxu0  ;;  %v1463_v1 = vmax.f32 %v1361_v47, 0.0 }
 0x1a5   : > { %v1464_v6 = vmax.f32 %v1364_v61, 0.0 }
 0x1a7   : > { %v2523_v8 = vpack.c.bf16 %v1464_v6, %v1463_v1 }
 0x1ad   : > { %v1368_v10 = vpop.f32.mrb[20].mxu0 }
 0x1ae   : > { %v1369_v4 = vadd.f32 %v2503_v23, %v1368_v10  ;;  %v1370_v11 = vpop.f32.mrb[21].mxu0 }
 0x1af   : > { %v1371_v9 = vpop.f32.mrb[22].mxu0 }
 0x1b0   : > { %v1372_v12 = vadd.f32 %v2503_v23, %v1371_v9  ;;  %v1373_v27 = vpop.f32.mrb[23].mxu0  ;;  %v1465_v30 = vmax.f32 %v1369_v4, 0.0  ;;  %v1545_v4 = vsel %vm920_vm2, %v2515_v46, 0 }
 0x1b2   : > { %v1466_v53 = vmax.f32 %v1372_v12, 0.0 }
 0x1b4   : > { %v2527_v29 = vpack.c.bf16 %v1466_v53, %v1465_v30 }
 0x1bc   : > { %v1376_v14 = vpop.f32.mrb[24].mxu0 }
 0x1bd   : > { %v1377_v0 = vadd.f32 %v2503_v23, %v1376_v14  ;;  %v1378_v13 = vpop.f32.mrb[25].mxu0 }
 0x1be   : > { %v1379_v16 = vpop.f32.mrb[26].mxu0  ;;  %v1548_v13 = vsel %vm920_vm2, %v2519_v33, 0 }
 0x1bf   : > { %v1380_v60 = vadd.f32 %v2503_v23, %v1379_v16  ;;  %v1381_v55 = vpop.f32.mrb[27].mxu0  ;;  %v1467_v28 = vmax.f32 %v1377_v0, 0.0 }
 0x1c1   : > { %v1468_v17 = vmax.f32 %v1380_v60, 0.0 }
 0x1c3   : > { %v2531_v22 = vpack.c.bf16 %v1468_v17, %v1467_v28 }
 0x1c9   : > { %v1384_v20 = vpop.f32.mrb[28].mxu0 }
 0x1ca   : > { %v1385_v21 = vadd.f32 %v2503_v23, %v1384_v20  ;;  %v1386_v25 = vpop.f32.mrb[29].mxu0 }
 0x1cb   : > { %v1387_v7 = vpop.f32.mrb[30].mxu0 }
 0x1cc   : > { %v1388_v26 = vadd.f32 %v2503_v23, %v1387_v7  ;;  %v1389_v15 = vpop.f32.mrb[31].mxu0  ;;  %v1469_v31 = vmax.f32 %v1385_v21, 0.0  ;;  %v1551_v7 = vsel %vm920_vm2, %v2523_v8, 0 }
 0x1ce   : > { %v1470_v34 = vmax.f32 %v1388_v26, 0.0 }
 0x1d0   : > { %v2542_v35 = vpack.c.bf16 %v1470_v34, %v1469_v31 }
 0x1d8   : > { %v1392_v39 = vpop.f32.mrb[32].mxu0 }
 0x1d9   : > { %v1393_v40 = vadd.f32 %v2503_v23, %v1392_v39  ;;  %v1394_v52 = vpop.f32.mrb[33].mxu0 }
 0x1da   : > { %v1395_v42 = vpop.f32.mrb[34].mxu0 }
 0x1db   : > { %v1396_v56 = vadd.f32 %v2503_v23, %v1395_v42  ;;  %v1397_v63 = vpop.f32.mrb[35].mxu0  ;;  %v1471_v43 = vmax.f32 %v1393_v40, 0.0  ;;  %v1554_v40 = vsel %vm920_vm2, %v2527_v29, 0 }
 0x1dd   : > { %v1472_v2 = vmax.f32 %v1396_v56, 0.0 }
 0x1df   : > { %v1495_v44 = vpack.c.bf16 %v1472_v2, %v1471_v43 }
 0x1e1   : > { %1793 = vmatprep.subr.msk.bf16.mxu1 %vm920_vm2, %v1495_v44 }
 0x1e2   : > { %1774 = vmatpush3.bf16.xpose.msra.mxu1 %v1539_v18 }
 0x1e5   : > { %v1400_v45 = vpop.f32.mrb[36].mxu0 }
 0x1e6   : > { %v1401_v48 = vadd.f32 %v2503_v23, %v1400_v45  ;;  %v1402_v49 = vpop.f32.mrb[37].mxu0  ;;  %v1557_v45 = vsel %vm920_vm2, %v2531_v22, 0  ;;  %v1867_v22 = vld [vmem:[%s2610_s3 + $0x8] ss:$0 sps:$4 sm:$0xff]  }
 0x1e7   : > { %v1403_v50 = vpop.f32.mrb[38].mxu0 }
 0x1e8   : > { %v1404_v51 = vadd.f32 %v2503_v23, %v1403_v50  ;;  %v1405_v54 = vpop.f32.mrb[39].mxu0  ;;  %v1473_v36 = vmax.f32 %v1401_v48, 0.0 }
 0x1ea   : > { %v1474_v5 = vmax.f32 %v1404_v51, 0.0 }
 0x1ec   : > { %v1496_v19 = vpack.c.bf16 %v1474_v5, %v1473_v36 }
 0x1ee   : > { %1794 = vmatprep.subr.msk.bf16.mxu1 %vm920_vm2, %v1496_v19 }
 0x1ef   : > { %1776 = vmatpush3.bf16.xpose.msra.mxu1 %v1542_v57  ;;  %v1560_v57 = vsel %vm920_vm2, %v2542_v35, 0 }
 0x1f4   : > { %v1408_v47 = vpop.f32.mrb[40].mxu0 }
 0x1f5   : > { %v1409_v24 = vadd.f32 %v2503_v23, %v1408_v47  ;;  %v1410_v58 = vpop.f32.mrb[41].mxu0 }
 0x1f6   : > { %v1411_v59 = vpop.f32.mrb[42].mxu0 }
 0x1f7   : > { %v1412_v61 = vadd.f32 %v2503_v23, %v1411_v59  ;;  %v1413_v62 = vpop.f32.mrb[43].mxu0  ;;  %v1475_v1 = vmax.f32 %v1409_v24, 0.0 }
 0x1f9   : > { %v1476_v6 = vmax.f32 %v1412_v61, 0.0  ;;  %v1517_v35 = vpop.permute.xlu1 %1516 }
 0x1fb   : > { %v1497_v10 = vpack.c.bf16 %v1476_v6, %v1475_v1 }
 0x1fd   : > { %1795 = vmatprep.subr.msk.bf16.mxu1 %vm920_vm2, %v1497_v10  ;;  %v1522_v6 = vpop.permute.xlu1 %1521 }
 0x1fe   : > { %1778 = vmatpush3.bf16.xpose.msra.mxu1 %v1545_v4 }
 0x201   : > { %v1416_v11 = vpop.f32.mrb[44].mxu0 }
 0x202   : > { %v1417_v41 = vadd.f32 %v2503_v23, %v1416_v11  ;;  %v1418_v9 = vpop.f32.mrb[45].mxu0 }
 0x203   : > { %v1419_v12 = vpop.f32.mrb[46].mxu0 }
 0x204   : > { %v1420_v27 = vadd.f32 %v2503_v23, %v1419_v12  ;;  %v1421_v30 = vpop.f32.mrb[47].mxu0  ;;  %v1477_v53 = vmax.f32 %v1417_v41, 0.0 }
 0x206   : > { %v1478_v14 = vmax.f32 %v1420_v27, 0.0 }
 0x208   : > { %v1498_v0 = vpack.c.bf16 %v1478_v14, %v1477_v53 }
 0x20a   : > { %1796 = vmatprep.subr.msk.bf16.mxu1 %vm920_vm2, %v1498_v0 }
 0x20b   : > { %1780 = vmatpush3.bf16.xpose.msra.mxu1 %v1548_v13 }
 0x210   : > { %v1424_v16 = vpop.f32.mrb[48].mxu0 }
 0x211   : > { %v1425_v46 = vadd.f32 %v2503_v23, %v1424_v16  ;;  %v1426_v60 = vpop.f32.mrb[49].mxu0 }
 0x212   : > { %v1427_v55 = vpop.f32.mrb[50].mxu0 }
 0x213   : > { %v1428_v28 = vadd.f32 %v2503_v23, %v1427_v55  ;;  %v1429_v17 = vpop.f32.mrb[51].mxu0  ;;  %v1479_v20 = vmax.f32 %v1425_v46, 0.0 }
 0x215   : > { %v1480_v21 = vmax.f32 %v1428_v28, 0.0 }
 0x217   : > { %v1499_v25 = vpack.c.bf16 %v1480_v21, %v1479_v20 }
 0x219   : > { %1797 = vmatprep.subr.msk.bf16.mxu1 %vm920_vm2, %v1499_v25 }
 0x21a   : > { %1782 = vmatpush3.bf16.xpose.msra.mxu1 %v1551_v7 }
 0x21d   : > { %v1432_v26 = vpop.f32.mrb[52].mxu0 }
 0x21e   : > { %v1433_v33 = vadd.f32 %v2503_v23, %v1432_v26  ;;  %v1434_v15 = vpop.f32.mrb[53].mxu0 }
 0x21f   : > { %v1435_v31 = vpop.f32.mrb[54].mxu0 }
 0x220   : > { %v1436_v34 = vadd.f32 %v2503_v23, %v1435_v31  ;;  %v1437_v32 = vpop.f32.mrb[55].mxu0  ;;  %v1481_v37 = vmax.f32 %v1433_v33, 0.0 }
 0x222   : > { %v1482_v38 = vmax.f32 %v1436_v34, 0.0 }
 0x224   : > { %v1500_v39 = vpack.c.bf16 %v1482_v38, %v1481_v37 }
 0x226   : > { %1798 = vmatprep.subr.msk.bf16.mxu1 %vm920_vm2, %v1500_v39 }
 0x227   : > { %1784 = vmatpush3.bf16.xpose.msra.mxu1 %v1554_v40 }
 0x22c   : > { %v1440_v52 = vpop.f32.mrb[56].mxu0 }
 0x22d   : > { %v1441_v8 = vadd.f32 %v2503_v23, %v1440_v52  ;;  %v1442_v42 = vpop.f32.mrb[57].mxu0 }
 0x22e   : > { %v1443_v56 = vpop.f32.mrb[58].mxu0 }
 0x22f   : > { %v1444_v63 = vadd.f32 %v2503_v23, %v1443_v56  ;;  %v1445_v43 = vpop.f32.mrb[59].mxu0  ;;  %v1483_v2 = vmax.f32 %v1441_v8, 0.0 }
 0x231   : > { %v1484_v44 = vmax.f32 %v1444_v63, 0.0 }
 0x233   : > { %v1501_v18 = vpack.c.bf16 %v1484_v44, %v1483_v2 }
 0x235   : > { %1799 = vmatprep.subr.msk.bf16.mxu1 %vm920_vm2, %v1501_v18 }
 0x236   : > { %1786 = vmatpush3.bf16.xpose.msra.mxu1 %v1557_v45 }
 0x239   : > { %v1448_v48 = vpop.f32.mrb[60].mxu0 }
 0x23a   : > { %v1449_v29 = vadd.f32 %v2503_v23, %v1448_v48  ;;  %v1450_v49 = vpop.f32.mrb[61].mxu0 }
 0x23b   : > { %v1451_v50 = vpop.f32.mrb[62].mxu0 }
 0x23c   : > { %v1452_v51 = vadd.f32 %v2503_v23, %v1451_v50  ;;  %v1453_v54 = vpop.f32.mrb[63].mxu0  ;;  %v1485_v36 = vmax.f32 %v1449_v29, 0.0  ;;  %v1512_v23 = vpop.permute.xlu0 %1511 }
 0x23e   : > { %v1486_v5 = vmax.f32 %v1452_v51, 0.0 }
 0x240   : > { %v1502_v19 = vpack.c.bf16 %v1486_v5, %v1485_v36 }
 0x242   : > { %1800 = vmatprep.subr.msk.bf16.mxu1 %vm920_vm2, %v1502_v19 }
 0x243   : > { %1788 = vmatpush3.bf16.xpose.msra.mxu1 %v1560_v57 }
 0x24a   : > { %1790 = vmatmul.mubr.msk.bf16.vlgmr.msra.gmra.mrb[0].mxu1 %vm920_vm2, %v2536_v3 }
 0x24b   : > { %1791 = vmatprep.mubr.msk.bf16.mxu1 %vm920_vm2, %v1867_v22 }
 0x252   : > { %1792 = vmatmul.mubr.msk.bf16.gmra.mrb[4].mxu1 %vm920_vm2, %v1867_v22 }
 0x31d   : > { %v1620_v47 = vpop.f32.mrb[0].mxu1 }
 0x31e   : > { %v1621_v24 = vadd.f32 %v1620_v47, %v1512_v23  ;;  %v1622_v58 = vpop.f32.mrb[1].mxu1 }
 0x31f   : > { %v1623_v59 = vadd.f32 %v1622_v58, %v1512_v23  ;;  %v1624_v61 = vpop.f32.mrb[2].mxu1 }
 0x320   : > { %1637 = vst [vmem:[%s224_s16] sm:$0xff] %v1621_v24  ;;  %v1625_v62 = vadd.f32 %v1624_v61, %v1517_v35  ;;  %v1626_v1 = vpop.f32.mrb[3].mxu1 }
 0x321   : > { %1638 = vst [vmem:[%s224_s16 + $0x8] sm:$0xff] %v1623_v59  ;;  %v1627_v3 = vadd.f32 %v1626_v1, %v1517_v35 }
 0x322   : > { %1639 = vst [vmem:[%s224_s16 + $0x10] sm:$0xff] %v1625_v62 }
 0x323   : > { %1640 = vst [vmem:[%s224_s16 + $0x18] sm:$0xff] %v1627_v3 }
 0x325   : > { %v1630_v10 = vpop.f32.mrb[4].mxu1 }
 0x326   : > { %v1631_v4 = vadd.f32 %v1630_v10, %v1522_v6  ;;  %v1632_v11 = vpop.f32.mrb[5].mxu1 }
 0x327   : > { %v1633_v41 = vadd.f32 %v1632_v11, %v1522_v6  ;;  %v1634_v9 = vpop.f32.mrb[6].mxu1 }
 0x328   : > { %1641 = vst [vmem:[%s224_s16 + $0x20] sm:$0xff] %v1631_v4  ;;  %v1635_v12 = vpop.f32.mrb[7].mxu1 }
 0x329   : > { %1642 = vst [vmem:[%s224_s16 + $0x28] sm:$0xff] %v1633_v41 }
 0x32a PF: > { %s15_s18 = sadd.s32 1, %s1874_s18  }
 0x32b   : > { %p12_p4 = scmp.ge.s32.totalorder %s15_s18, 4  }
 0x32d   :  { %14 = sbr.rel (!%p12_p4) target bundleno = 1 (0x1), region = 70 }

</bundles_post_ra>
